<compile_context>
chip_gen: v6e
topology: v6e:2x2x1
jax: 0.10.0
libtpu: 0.0.40
codegen_flags: <defaults>
</compile_context>

<pallas_src>
import functools

import numpy as np
import jax
import jax.numpy as jnp
from jax import lax
from jax.experimental import pallas as pl
from jax.experimental.pallas import tpu as pltpu


def _hanning_constants(center_R: int):
    """1D separable Hanning weights + total 2D table sum (host constants)."""
    h1 = np.hanning(center_R + 2)                 # endpoints are exactly 0
    hw2 = np.outer(h1, h1)
    hw2 /= hw2.sum()
    hann2d = hw2[1:-1, 1:-1]                      # torch's create_hanning_mask
    s = h1.sum()
    hann_1d = tuple(float(v / s) for v in h1[1:-1])   # hr[i]*hr[j] == hann2d[i,j]
    return hann_1d, float(hann2d.sum())


def _loss_kernel(ibox_ref, rxy_ref, cls_ref, loc_ref, out_ref,
                 cls_acc, topk_acc, box_cls, box_sl1, *,
                 B, H, W, RB, n_h, center_R, pos_R, pos_num,
                 hann_1d, c_neg, scale_400):
    b = pl.program_id(0)
    h = pl.program_id(1)
    r0 = h * RB

    half_c = center_R // 2
    half_l = pos_R // 2
    inv_b = 1.0 / float(B)

    cxl = ibox_ref[b, 0]                 # rounded row center
    cyl = ibox_ref[b, 1]                 # rounded col center
    blk_lo = ibox_ref[b, 2]              # first row block touching pos box
    blk_hi = ibox_ref[b, 3]              # last  row block touching pos box

    # ---------------- per-sample accumulator init --------------------------
    @pl.when(h == 0)
    def _():
        cls_acc[...] = jnp.zeros_like(cls_acc)
        topk_acc[...] = jnp.full_like(topk_acc, -jnp.inf)
        box_cls[...] = jnp.full_like(box_cls, -jnp.inf)
        box_sl1[...] = jnp.zeros_like(box_sl1)

    x = cls_ref[0, 0].astype(jnp.float32)                       # (RB, W)
    r = lax.broadcasted_iota(jnp.int32, (RB, 1), 0) + r0        # global image rows
    c = lax.broadcasted_iota(jnp.int32, (1, W), 1)               # image cols
    lane = lax.broadcasted_iota(jnp.int32, (1, 128), 1)

    need_row_mask = (H % RB) != 0
    if need_row_mask:
        valid = r < H                                            # (RB, 1)
        x = jnp.where(valid, x, 0.0)                             # sanitize padded rows
    else:
        valid = None

    # ---------------- BalanceLoss partial (single fused reduction) ---------
    # bce(x, t) = max(x,0) - x*t + log1p(exp(-|x|)); t = 1 only inside center box
    bce0 = jnp.maximum(x, 0.0) + jnp.log1p(jnp.exp(-jnp.abs(x)))

    touches_center = jnp.logical_and(cxl + half_c >= r0, cxl - half_c < r0 + RB)

    @pl.when(touches_center)
    def _():
        dr = r - cxl                                             # (RB, 1)
        dc = c - cyl                                             # (1, W)
        rw = jnp.where(dr == -half_c, hann_1d[0], 0.0)
        cw = jnp.where(dc == -half_c, hann_1d[0], 0.0)
        for k in range(1, center_R):
            off = k - half_c
            rw = rw + jnp.where(dr == off, hann_1d[k], 0.0)
            cw = cw + jnp.where(dc == off, hann_1d[k], 0.0)
        hv = rw * cw                                             # separable Hanning
        pos = hv > 0.0                                           # == target mask
        wgt = jnp.where(pos, hv * inv_b, c_neg)
        if valid is not None:
            wgt = jnp.where(valid, wgt, 0.0)
        bce = bce0 - jnp.where(pos, x, 0.0)
        cls_acc[...] = cls_acc[...] + jnp.sum(wgt * bce)

    @pl.when(jnp.logical_not(touches_center))
    def _():
        if valid is not None:
            s = jnp.sum(jnp.where(valid, bce0, 0.0))
        else:
            s = jnp.sum(bce0)
        cls_acc[...] = cls_acc[...] + c_neg * s

    # ---------------- running top-k (LocLoss threshold) --------------------
    # TODO(synk): ties at the threshold differ from torch.topk's exact-k selection.
    if valid is not None:
        work = jnp.where(valid, x, -jnp.inf)
    else:
        work = x
    acc = topk_acc[...]
    new_acc = jnp.full((1, 128), -jnp.inf, jnp.float32)
    for t in range(pos_num):
        m = jnp.maximum(jnp.max(work), jnp.max(acc))
        work = jnp.where(work == m, -jnp.inf, work)
        acc = jnp.where(acc == m, -jnp.inf, acc)
        new_acc = jnp.where(lane == t, m, new_acc)
    topk_acc[...] = new_acc

    # ---------------- LocLoss box gather (only on box row blocks) ----------
    is_box_step = jnp.logical_and(h >= blk_lo, h <= blk_hi)

    @pl.when(is_box_step)
    def _():
        # extract (ratex, ratey) of this sample from the tiny resident (B, 2) table
        rall = rxy_ref[...]
        rowm = lax.broadcasted_iota(jnp.int32, (B, 2), 0) == b
        colm = lax.broadcasted_iota(jnp.int32, (B, 2), 1)
        rx = jnp.sum(jnp.where(jnp.logical_and(rowm, colm == 0), rall, 0.0))
        ry = jnp.sum(jnp.where(jnp.logical_and(rowm, colm == 1), rall, 0.0))

        locx = loc_ref[0, 0].astype(jnp.float32)                 # (RB, W)
        locy = loc_ref[0, 1].astype(jnp.float32)
        rf = r.astype(jnp.float32)
        cf = c.astype(jnp.float32)
        bias_x = rx - rf * (1.0 / (H - 1))                       # (RB, 1)
        bias_y = ry - cf * (1.0 / (W - 1))                       # (1, W)
        if scale_400:
            bias_x = bias_x * float(H - 1)
            bias_y = bias_y * float(W - 1)
        dxv = locx - bias_x
        dyv = locy - bias_y

        def _sl1(d):
            a = jnp.abs(d)
            return jnp.where(a < 1.0, 0.5 * d * d, a - 0.5)

        sl1v = _sl1(dxv) + _sl1(dyv)                             # (RB, W)

        bc = box_cls[...]
        bs = box_sl1[...]
        for u in range(pos_R):
            rr = cxl + (u - half_l)                              # scalar image row
            rr_ok = jnp.logical_and(rr >= 0, rr < H)
            rsel = jnp.logical_and(r == rr, rr_ok)               # (RB, 1)
            for v in range(pos_R):
                cc = cyl + (v - half_l)
                sel = jnp.logical_and(rsel, c == cc)             # (RB, W)
                j = u * pos_R + v
                cls_uv = jnp.max(jnp.where(sel, x, -jnp.inf))
                sl1_uv = jnp.sum(jnp.where(sel, sl1v, 0.0))
                bc = jnp.where(lane == j, jnp.maximum(bc, cls_uv), bc)
                bs = jnp.where(lane == j, bs + sl1_uv, bs)
        box_cls[...] = bc
        box_sl1[...] = bs

    # ---------------- finalize per-sample partials --------------------------
    @pl.when(h == n_h - 1)
    def _():
        cls_s = jnp.max(cls_acc[...])                            # all lanes identical
        kth = jnp.min(jnp.where(lane < pos_num, topk_acc[...], jnp.inf))
        posm = jnp.logical_and(lane < pos_R * pos_R, box_cls[...] >= kth)
        sl1_s = jnp.sum(jnp.where(posm, box_sl1[...], 0.0))
        cnt_s = 2.0 * jnp.sum(posm.astype(jnp.float32))
        lane_o = lax.broadcasted_iota(jnp.int32, (1, 1, 128), 2)
        out_ref[...] = (jnp.where(lane_o == 0, cls_s, 0.0)
                        + jnp.where(lane_o == 1, sl1_s, 0.0)
                        + jnp.where(lane_o == 2, cnt_s, 0.0))


def loss_func_forward(cls_input, loc_input, center_rate, *,
                      center_R=3, neg_weight=15.0,
                      pos_label=3, pos_num=4,
                      loc_label="norm", loc_weight=1.0,
                      row_block=None):
    """Forward of LossFunc: returns (cls_loss, loc_loss * loc_weight)."""
    B, C, H, W = cls_input.shape
    assert C == 1, "BalanceLoss weight assignment requires a single cls channel"
    assert H > 1 and W > 1
    assert center_R % 2 == 1 and pos_label % 2 == 1
    assert pos_num <= 128 and pos_label * pos_label <= 128

    # row-block size: multiple of 8 (or full H), ~64K elements per plane per block
    if row_block is None:
        rb = max(8, ((65536 // max(W, 1)) // 8) * 8)
    else:
        rb = row_block
    if rb >= H:
        rb = H
    n_h = -(-H // rb)

    ratex, ratey = center_rate
    rx = jnp.broadcast_to(jnp.asarray(ratex, jnp.float32).reshape(-1), (B,))
    ry = jnp.broadcast_to(jnp.asarray(ratey, jnp.float32).reshape(-1), (B,))
    cx = jnp.round(rx * (H - 1)).astype(jnp.int32)
    cy = jnp.round(ry * (W - 1)).astype(jnp.int32)

    half_l = pos_label // 2
    blk_lo = jnp.clip((cx - half_l) // rb, 0, n_h - 1).astype(jnp.int32)
    blk_hi = jnp.clip((cx + half_l) // rb, 0, n_h - 1).astype(jnp.int32)
    ibox = jnp.stack([cx, cy, blk_lo, blk_hi], axis=-1)          # (B, 4) int32
    rxy = jnp.stack([rx, ry], axis=-1)                           # (B, 2) f32

    hann_1d, hann_sum = _hanning_constants(center_R)
    # hoisted constants (interior-center-box assumption, see module docstring)
    neg_num = float(B * H * W - B * center_R * center_R)
    c_neg = float(neg_weight) / neg_num
    w_tot = hann_sum + float(neg_weight)

    kernel = functools.partial(
        _loss_kernel, B=B, H=H, W=W, RB=rb, n_h=n_h,
        center_R=center_R, pos_R=pos_label, pos_num=pos_num,
        hann_1d=hann_1d, c_neg=c_neg, scale_400=(loc_label == "400"))

    grid_spec = pltpu.PrefetchScalarGridSpec(
        num_scalar_prefetch=1,
        grid=(B, n_h),
        in_specs=[
            # small (ratex, ratey) table, resident for the whole kernel
            pl.BlockSpec((B, 2), lambda b, h, ibox: (0, 0)),
            # cls logits, one row block per step
            pl.BlockSpec((1, 1, rb, W), lambda b, h, ibox: (b, 0, h, 0)),
            # loc offsets: index clamped to the row blocks containing the pos box,
            # so the DMA only happens for those 1-2 blocks per sample
            pl.BlockSpec((1, 2, rb, W),
                         lambda b, h, ibox: (b, 0,
                                             jnp.minimum(jnp.maximum(h, ibox[b, 2]),
                                                         ibox[b, 3]),
                                             0)),
        ],
        out_specs=pl.BlockSpec((1, 1, 128), lambda b, h, ibox: (b, 0, 0)),
        scratch_shapes=[
            pltpu.VMEM((1, 128), jnp.float32),   # cls partial sum (broadcast)
            pltpu.VMEM((1, 128), jnp.float32),   # running top-k values
            pltpu.VMEM((1, 128), jnp.float32),   # box cls logits
            pltpu.VMEM((1, 128), jnp.float32),   # box smooth-l1 values
        ])

    cost = pl.CostEstimate(
        flops=int(35 * B * H * W),
        transcendentals=int(2 * B * H * W),
        bytes_accessed=int(4 * B * H * W + 8 * B * min(H, 2 * rb) * W + 4 * B * 128))

    out = pl.pallas_call(
        kernel,
        out_shape=jax.ShapeDtypeStruct((B, 1, 128), jnp.float32),
        grid_spec=grid_spec,
        compiler_params=pltpu.CompilerParams(
            dimension_semantics=("parallel", "arbitrary"),
            vmem_limit_bytes=32 * 1024 * 1024),
        cost_estimate=cost,
    )(ibox, rxy, cls_input, loc_input)

    cls_loss = jnp.sum(out[:, 0, 0]) / w_tot
    sl1_sum = jnp.sum(out[:, 0, 1])
    cnt = jnp.sum(out[:, 0, 2])
    # torch returns 0 when the topk/box intersection is empty (documented diff
    # from smooth_l1_loss over an empty tensor, which would NaN).
    loc_loss = jnp.where(cnt > 0.0, sl1_sum / jnp.maximum(cnt, 1.0), 0.0)
    return cls_loss, loc_loss * float(loc_weight)


if __name__ == "__main__":
    B, C, H, W = 2, 1, 16, 16
    key = jax.random.PRNGKey(0)
    k1, k2, k3, k4 = jax.random.split(key, 4)

    cls_input = jax.random.normal(k1, (B, C, H, W), jnp.float32)   # cls logits
    loc_input = jax.random.normal(k2, (B, 2, H, W), jnp.float32)   # loc offsets
    # keep centers away from the border so the center box is fully interior
    # (the torch code would crash in the masked weight assignment otherwise)
    ratex = jax.random.uniform(k3, (B,), jnp.float32, minval=0.3, maxval=0.7)
    ratey = jax.random.uniform(k4, (B,), jnp.float32, minval=0.3, maxval=0.7)

    cls_loss, loc_loss = loss_func_forward(
        cls_input, loc_input, (ratex, ratey),
        center_R=3, neg_weight=15.0, pos_label=3, pos_num=4,
        loc_label="norm", loc_weight=1.0)

    jax.block_until_ready((cls_loss, loc_loss))
    assert jnp.isfinite(cls_loss) and jnp.isfinite(loc_loss)
    print("KERNEL_OK")
</pallas_src>

<mosaic_0001>
module attributes {stable_mosaic.version = 11 : i64} {
  func.func @_loss_kernel(%arg0: i32, %arg1: i32, %arg2: memref<2x4xi32, #tpu.memory_space<smem>>, %arg3: memref<2x2xf32, #tpu.memory_space<vmem>>, %arg4: memref<1x1x16x16xf32, #tpu.memory_space<vmem>>, %arg5: memref<1x2x16x16xf32, #tpu.memory_space<vmem>>, %arg6: memref<1x1x128xf32, #tpu.memory_space<vmem>>, %arg7: memref<1x128xf32, #tpu.memory_space<vmem>>, %arg8: memref<1x128xf32, #tpu.memory_space<vmem>>, %arg9: memref<1x128xf32, #tpu.memory_space<vmem>>, %arg10: memref<1x128xf32, #tpu.memory_space<vmem>>) attributes {dimension_semantics = [#tpu.dimension_semantics<parallel>, #tpu.dimension_semantics<arbitrary>], iteration_bounds = array<i64: 2, 1>, scalar_prefetch = 1 : i64, scratch_operands = 4 : i64, tpu.core_type = #tpu.core_type<tc>, window_params = [{pipeline_mode = #tpu.pipeline_mode<synchronous>, transform_indices = @transform_0, window_bounds = array<i64: 2, 2>}, {transform_indices = @transform_1, window_bounds = array<i64: 1, 1, 16, 16>}, {transform_indices = @transform_2, window_bounds = array<i64: 1, 2, 16, 16>}, {transform_indices = @transform_3, window_bounds = array<i64: 1, 1, 128>}]} {
    %c16_i32 = arith.constant 16 : i32
    %0 = arith.muli %arg1, %c16_i32 : i32
    %1 = arith.index_cast %arg0 : i32 to index
    %c0 = arith.constant 0 : index
    %2 = memref.load %arg2[%1, %c0] : memref<2x4xi32, #tpu.memory_space<smem>>
    %3 = arith.index_cast %arg0 : i32 to index
    %c1 = arith.constant 1 : index
    %4 = memref.load %arg2[%3, %c1] : memref<2x4xi32, #tpu.memory_space<smem>>
    %5 = arith.index_cast %arg0 : i32 to index
    %c2 = arith.constant 2 : index
    %6 = memref.load %arg2[%5, %c2] : memref<2x4xi32, #tpu.memory_space<smem>>
    %7 = arith.index_cast %arg0 : i32 to index
    %c3 = arith.constant 3 : index
    %8 = memref.load %arg2[%7, %c3] : memref<2x4xi32, #tpu.memory_space<smem>>
    %c0_i32 = arith.constant 0 : i32
    %9 = arith.cmpi eq, %arg1, %c0_i32 : i32
    %10 = arith.extui %9 : i1 to i32
    %c0_i32_0 = arith.constant 0 : i32
    %11 = arith.cmpi ne, %10, %c0_i32_0 : i32
    scf.if %11 {
      %cst_34 = arith.constant 0.000000e+00 : f32
      %125 = vector.broadcast %cst_34 : f32 to vector<1x128xf32>
      %c0_35 = arith.constant 0 : index
      %c0_36 = arith.constant 0 : index
      %126 = vector.load %arg7[%c0_35, %c0_36] : memref<1x128xf32, #tpu.memory_space<vmem>>, vector<1x128xf32>
      tpu.vector_store %arg7[%c0_35, %c0_36], %125 {strides = array<i32>} : memref<1x128xf32, #tpu.memory_space<vmem>>, vector<1x128xf32>,
      %cst_37 = arith.constant 0xFF800000 : f32
      %127 = vector.broadcast %cst_37 : f32 to vector<1x128xf32>
      %c0_38 = arith.constant 0 : index
      %c0_39 = arith.constant 0 : index
      %128 = vector.load %arg8[%c0_38, %c0_39] : memref<1x128xf32, #tpu.memory_space<vmem>>, vector<1x128xf32>
      tpu.vector_store %arg8[%c0_38, %c0_39], %127 {strides = array<i32>} : memref<1x128xf32, #tpu.memory_space<vmem>>, vector<1x128xf32>,
      %cst_40 = arith.constant 0xFF800000 : f32
      %129 = vector.broadcast %cst_40 : f32 to vector<1x128xf32>
      %c0_41 = arith.constant 0 : index
      %c0_42 = arith.constant 0 : index
      %130 = vector.load %arg9[%c0_41, %c0_42] : memref<1x128xf32, #tpu.memory_space<vmem>>, vector<1x128xf32>
      tpu.vector_store %arg9[%c0_41, %c0_42], %129 {strides = array<i32>} : memref<1x128xf32, #tpu.memory_space<vmem>>, vector<1x128xf32>,
      %cst_43 = arith.constant 0.000000e+00 : f32
      %131 = vector.broadcast %cst_43 : f32 to vector<1x128xf32>
      %c0_44 = arith.constant 0 : index
      %c0_45 = arith.constant 0 : index
      %132 = vector.load %arg10[%c0_44, %c0_45] : memref<1x128xf32, #tpu.memory_space<vmem>>, vector<1x128xf32>
      tpu.vector_store %arg10[%c0_44, %c0_45], %131 {strides = array<i32>} : memref<1x128xf32, #tpu.memory_space<vmem>>, vector<1x128xf32>,
    } else {
    }
    %c0_1 = arith.constant 0 : index
    %c0_2 = arith.constant 0 : index
    %c0_3 = arith.constant 0 : index
    %c0_4 = arith.constant 0 : index
    %12 = vector.load %arg4[%c0_1, %c0_2, %c0_3, %c0_4] : memref<1x1x16x16xf32, #tpu.memory_space<vmem>>, vector<1x1x16x16xf32>
    %13 = vector.shape_cast %12 : vector<1x1x16x16xf32> to vector<16x16xf32>
    %14 = tpu.iota {dimensions = array<i32: 0>} : vector<16x1xi32>
    %15 = vector.broadcast %0 : i32 to vector<16x1xi32>
    %16 = arith.addi %14, %15 : vector<16x1xi32>
    %17 = tpu.iota {dimensions = array<i32: 1>} : vector<1x16xi32>
    %18 = tpu.iota {dimensions = array<i32: 1>} : vector<1x128xi32>
    %cst = arith.constant 0.000000e+00 : f32
    %19 = vector.broadcast %cst : f32 to vector<16x16xf32>
    %20 = arith.maximumf %13, %19 : vector<16x16xf32>
    %21 = math.absf %13 : vector<16x16xf32>
    %cst_5 = arith.constant 0.000000e+00 : f32
    %22 = vector.broadcast %cst_5 : f32 to vector<16x16xf32>
    %23 = arith.subf %22, %21 : vector<16x16xf32>
    %24 = math.exp %23 : vector<16x16xf32>
    %25 = math.log1p %24 : vector<16x16xf32>
    %26 = arith.addf %20, %25 : vector<16x16xf32>
    %c1_i32 = arith.constant 1 : i32
    %27 = arith.addi %2, %c1_i32 : i32
    %28 = arith.cmpi sge, %27, %0 : i32
    %c1_i32_6 = arith.constant 1 : i32
    %29 = arith.subi %2, %c1_i32_6 : i32
    %c16_i32_7 = arith.constant 16 : i32
    %30 = arith.addi %0, %c16_i32_7 : i32
    %31 = arith.cmpi slt, %29, %30 : i32
    %32 = arith.andi %28, %31 : i1
    %33 = arith.extui %32 : i1 to i32
    %c0_i32_8 = arith.constant 0 : i32
    %34 = arith.cmpi ne, %33, %c0_i32_8 : i32
    scf.if %34 {
      %125 = vector.broadcast %2 : i32 to vector<16x1xi32>
      %126 = arith.subi %16, %125 : vector<16x1xi32>
      %127 = vector.broadcast %4 : i32 to vector<1x16xi32>
      %128 = arith.subi %17, %127 : vector<1x16xi32>
      %c-1_i32 = arith.constant -1 : i32
      %129 = vector.broadcast %c-1_i32 : i32 to vector<16x1xi32>
      %130 = arith.cmpi eq, %126, %129 : vector<16x1xi32>
      %cst_34 = arith.constant 2.500000e-01 : f32
      %cst_35 = arith.constant 0.000000e+00 : f32
      %131 = vector.broadcast %cst_34 : f32 to vector<16x1xf32>
      %132 = vector.broadcast %cst_35 : f32 to vector<16x1xf32>
      %133 = arith.select %130, %131, %132 : vector<16x1xi1>, vector<16x1xf32>
      %c-1_i32_36 = arith.constant -1 : i32
      %134 = vector.broadcast %c-1_i32_36 : i32 to vector<1x16xi32>
      %135 = arith.cmpi eq, %128, %134 : vector<1x16xi32>
      %cst_37 = arith.constant 2.500000e-01 : f32
      %cst_38 = arith.constant 0.000000e+00 : f32
      %136 = vector.broadcast %cst_37 : f32 to vector<1x16xf32>
      %137 = vector.broadcast %cst_38 : f32 to vector<1x16xf32>
      %138 = arith.select %135, %136, %137 : vector<1x16xi1>, vector<1x16xf32>
      %c0_i32_39 = arith.constant 0 : i32
      %139 = vector.broadcast %c0_i32_39 : i32 to vector<16x1xi32>
      %140 = arith.cmpi eq, %126, %139 : vector<16x1xi32>
      %cst_40 = arith.constant 5.000000e-01 : f32
      %cst_41 = arith.constant 0.000000e+00 : f32
      %141 = vector.broadcast %cst_40 : f32 to vector<16x1xf32>
      %142 = vector.broadcast %cst_41 : f32 to vector<16x1xf32>
      %143 = arith.select %140, %141, %142 : vector<16x1xi1>, vector<16x1xf32>
      %144 = arith.addf %133, %143 : vector<16x1xf32>
      %c0_i32_42 = arith.constant 0 : i32
      %145 = vector.broadcast %c0_i32_42 : i32 to vector<1x16xi32>
      %146 = arith.cmpi eq, %128, %145 : vector<1x16xi32>
      %cst_43 = arith.constant 5.000000e-01 : f32
      %cst_44 = arith.constant 0.000000e+00 : f32
      %147 = vector.broadcast %cst_43 : f32 to vector<1x16xf32>
      %148 = vector.broadcast %cst_44 : f32 to vector<1x16xf32>
      %149 = arith.select %146, %147, %148 : vector<1x16xi1>, vector<1x16xf32>
      %150 = arith.addf %138, %149 : vector<1x16xf32>
      %c1_i32_45 = arith.constant 1 : i32
      %151 = vector.broadcast %c1_i32_45 : i32 to vector<16x1xi32>
      %152 = arith.cmpi eq, %126, %151 : vector<16x1xi32>
      %cst_46 = arith.constant 2.500000e-01 : f32
      %cst_47 = arith.constant 0.000000e+00 : f32
      %153 = vector.broadcast %cst_46 : f32 to vector<16x1xf32>
      %154 = vector.broadcast %cst_47 : f32 to vector<16x1xf32>
      %155 = arith.select %152, %153, %154 : vector<16x1xi1>, vector<16x1xf32>
      %156 = arith.addf %144, %155 : vector<16x1xf32>
      %c1_i32_48 = arith.constant 1 : i32
      %157 = vector.broadcast %c1_i32_48 : i32 to vector<1x16xi32>
      %158 = arith.cmpi eq, %128, %157 : vector<1x16xi32>
      %cst_49 = arith.constant 2.500000e-01 : f32
      %cst_50 = arith.constant 0.000000e+00 : f32
      %159 = vector.broadcast %cst_49 : f32 to vector<1x16xf32>
      %160 = vector.broadcast %cst_50 : f32 to vector<1x16xf32>
      %161 = arith.select %158, %159, %160 : vector<1x16xi1>, vector<1x16xf32>
      %162 = arith.addf %150, %161 : vector<1x16xf32>
      %163 = vector.broadcast %156 : vector<16x1xf32> to vector<16x16xf32>
      %164 = vector.broadcast %162 : vector<1x16xf32> to vector<16x16xf32>
      %165 = arith.mulf %163, %164 : vector<16x16xf32>
      %cst_51 = arith.constant 0.000000e+00 : f32
      %166 = vector.broadcast %cst_51 : f32 to vector<16x16xf32>
      %167 = arith.cmpf ogt, %165, %166 : vector<16x16xf32>
      %cst_52 = arith.constant 5.000000e-01 : f32
      %168 = vector.broadcast %cst_52 : f32 to vector<16x16xf32>
      %169 = arith.mulf %165, %168 : vector<16x16xf32>
      %cst_53 = arith.constant 0.0303643718 : f32
      %170 = vector.broadcast %cst_53 : f32 to vector<16x16xf32>
      %171 = arith.select %167, %169, %170 : vector<16x16xi1>, vector<16x16xf32>
      %cst_54 = arith.constant 0.000000e+00 : f32
      %172 = vector.broadcast %cst_54 : f32 to vector<16x16xf32>
      %173 = arith.select %167, %13, %172 : vector<16x16xi1>, vector<16x16xf32>
      %174 = arith.subf %26, %173 : vector<16x16xf32>
      %c0_55 = arith.constant 0 : index
      %c0_56 = arith.constant 0 : index
      %175 = vector.load %arg7[%c0_55, %c0_56] : memref<1x128xf32, #tpu.memory_space<vmem>>, vector<1x128xf32>
      %176 = arith.mulf %171, %174 : vector<16x16xf32>
      %177 = vector.shape_cast %176 : vector<16x16xf32> to vector<1x16x16xf32>
      %cst_57 = arith.constant dense<0.000000e+00> : vector<1xf32>
      %178 = vector.multi_reduction <add>, %177, %cst_57 [1, 2] : vector<1x16x16xf32> to vector<1xf32>
      %179 = vector.shape_cast %178 : vector<1xf32> to vector<1x1x1xf32>
      %180 = vector.extract %179[0, 0, 0] : f32 from vector<1x1x1xf32>
      %181 = vector.broadcast %180 : f32 to vector<1x128xf32>
      %182 = arith.addf %175, %181 : vector<1x128xf32>
      %c0_58 = arith.constant 0 : index
      %c0_59 = arith.constant 0 : index
      %183 = vector.load %arg7[%c0_58, %c0_59] : memref<1x128xf32, #tpu.memory_space<vmem>>, vector<1x128xf32>
      tpu.vector_store %arg7[%c0_58, %c0_59], %182 {strides = array<i32>} : memref<1x128xf32, #tpu.memory_space<vmem>>, vector<1x128xf32>,
    } else {
    }
    %true = arith.constant true
    %35 = arith.xori %32, %true : i1
    %36 = arith.extui %35 : i1 to i32
    %c0_i32_9 = arith.constant 0 : i32
    %37 = arith.cmpi ne, %36, %c0_i32_9 : i32
    scf.if %37 {
      %125 = vector.shape_cast %26 : vector<16x16xf32> to vector<1x16x16xf32>
      %cst_34 = arith.constant dense<0.000000e+00> : vector<1xf32>
      %126 = vector.multi_reduction <add>, %125, %cst_34 [1, 2] : vector<1x16x16xf32> to vector<1xf32>
      %127 = vector.shape_cast %126 : vector<1xf32> to vector<1x1x1xf32>
      %128 = vector.extract %127[0, 0, 0] : f32 from vector<1x1x1xf32>
      %c0_35 = arith.constant 0 : index
      %c0_36 = arith.constant 0 : index
      %129 = vector.load %arg7[%c0_35, %c0_36] : memref<1x128xf32, #tpu.memory_space<vmem>>, vector<1x128xf32>
      %cst_37 = arith.constant 0.0303643718 : f32
      %130 = arith.mulf %cst_37, %128 : f32
      %131 = vector.broadcast %130 : f32 to vector<1x128xf32>
      %132 = arith.addf %129, %131 : vector<1x128xf32>
      %c0_38 = arith.constant 0 : index
      %c0_39 = arith.constant 0 : index
      %133 = vector.load %arg7[%c0_38, %c0_39] : memref<1x128xf32, #tpu.memory_space<vmem>>, vector<1x128xf32>
      tpu.vector_store %arg7[%c0_38, %c0_39], %132 {strides = array<i32>} : memref<1x128xf32, #tpu.memory_space<vmem>>, vector<1x128xf32>,
    } else {
    }
    %c0_10 = arith.constant 0 : index
    %c0_11 = arith.constant 0 : index
    %38 = vector.load %arg8[%c0_10, %c0_11] : memref<1x128xf32, #tpu.memory_space<vmem>>, vector<1x128xf32>
    %cst_12 = arith.constant 0xFF800000 : f32
    %39 = vector.broadcast %cst_12 : f32 to vector<1x128xf32>
    %40 = vector.shape_cast %13 : vector<16x16xf32> to vector<1x16x16xf32>
    %cst_13 = arith.constant dense<0xFF800000> : vector<1xf32>
    %41 = vector.multi_reduction <maximumf>, %40, %cst_13 [1, 2] : vector<1x16x16xf32> to vector<1xf32>
    %42 = vector.shape_cast %41 : vector<1xf32> to vector<1x1x1xf32>
    %43 = vector.extract %42[0, 0, 0] : f32 from vector<1x1x1xf32>
    %44 = vector.shape_cast %38 : vector<1x128xf32> to vector<1x1x128xf32>
    %cst_14 = arith.constant dense<0xFF800000> : vector<1xf32>
    %45 = vector.multi_reduction <maximumf>, %44, %cst_14 [1, 2] : vector<1x1x128xf32> to vector<1xf32>
    %46 = vector.shape_cast %45 : vector<1xf32> to vector<1x1x1xf32>
    %47 = vector.extract %46[0, 0, 0] : f32 from vector<1x1x1xf32>
    %48 = arith.maximumf %43, %47 : f32
    %49 = vector.broadcast %48 : f32 to vector<16x16xf32>
    %50 = arith.cmpf oeq, %13, %49 : vector<16x16xf32>
    %cst_15 = arith.constant 0xFF800000 : f32
    %51 = vector.broadcast %cst_15 : f32 to vector<16x16xf32>
    %52 = arith.select %50, %51, %13 : vector<16x16xi1>, vector<16x16xf32>
    %53 = vector.broadcast %48 : f32 to vector<1x128xf32>
    %54 = arith.cmpf oeq, %38, %53 : vector<1x128xf32>
    %cst_16 = arith.constant 0xFF800000 : f32
    %55 = vector.broadcast %cst_16 : f32 to vector<1x128xf32>
    %56 = arith.select %54, %55, %38 : vector<1x128xi1>, vector<1x128xf32>
    %c0_i32_17 = arith.constant 0 : i32
    %57 = vector.broadcast %c0_i32_17 : i32 to vector<1x128xi32>
    %58 = arith.cmpi eq, %18, %57 : vector<1x128xi32>
    %59 = vector.broadcast %48 : f32 to vector<1x128xf32>
    %60 = arith.select %58, %59, %39 : vector<1x128xi1>, vector<1x128xf32>
    %61 = vector.shape_cast %52 : vector<16x16xf32> to vector<1x16x16xf32>
    %cst_18 = arith.constant dense<0xFF800000> : vector<1xf32>
    %62 = vector.multi_reduction <maximumf>, %61, %cst_18 [1, 2] : vector<1x16x16xf32> to vector<1xf32>
    %63 = vector.shape_cast %62 : vector<1xf32> to vector<1x1x1xf32>
    %64 = vector.extract %63[0, 0, 0] : f32 from vector<1x1x1xf32>
    %65 = vector.shape_cast %56 : vector<1x128xf32> to vector<1x1x128xf32>
    %cst_19 = arith.constant dense<0xFF800000> : vector<1xf32>
    %66 = vector.multi_reduction <maximumf>, %65, %cst_19 [1, 2] : vector<1x1x128xf32> to vector<1xf32>
    %67 = vector.shape_cast %66 : vector<1xf32> to vector<1x1x1xf32>
    %68 = vector.extract %67[0, 0, 0] : f32 from vector<1x1x1xf32>
    %69 = arith.maximumf %64, %68 : f32
    %70 = vector.broadcast %69 : f32 to vector<16x16xf32>
    %71 = arith.cmpf oeq, %52, %70 : vector<16x16xf32>
    %cst_20 = arith.constant 0xFF800000 : f32
    %72 = vector.broadcast %cst_20 : f32 to vector<16x16xf32>
    %73 = arith.select %71, %72, %52 : vector<16x16xi1>, vector<16x16xf32>
    %74 = vector.broadcast %69 : f32 to vector<1x128xf32>
    %75 = arith.cmpf oeq, %56, %74 : vector<1x128xf32>
    %cst_21 = arith.constant 0xFF800000 : f32
    %76 = vector.broadcast %cst_21 : f32 to vector<1x128xf32>
    %77 = arith.select %75, %76, %56 : vector<1x128xi1>, vector<1x128xf32>
    %c1_i32_22 = arith.constant 1 : i32
    %78 = vector.broadcast %c1_i32_22 : i32 to vector<1x128xi32>
    %79 = arith.cmpi eq, %18, %78 : vector<1x128xi32>
    %80 = vector.broadcast %69 : f32 to vector<1x128xf32>
    %81 = arith.select %79, %80, %60 : vector<1x128xi1>, vector<1x128xf32>
    %82 = vector.shape_cast %73 : vector<16x16xf32> to vector<1x16x16xf32>
    %cst_23 = arith.constant dense<0xFF800000> : vector<1xf32>
    %83 = vector.multi_reduction <maximumf>, %82, %cst_23 [1, 2] : vector<1x16x16xf32> to vector<1xf32>
    %84 = vector.shape_cast %83 : vector<1xf32> to vector<1x1x1xf32>
    %85 = vector.extract %84[0, 0, 0] : f32 from vector<1x1x1xf32>
    %86 = vector.shape_cast %77 : vector<1x128xf32> to vector<1x1x128xf32>
    %cst_24 = arith.constant dense<0xFF800000> : vector<1xf32>
    %87 = vector.multi_reduction <maximumf>, %86, %cst_24 [1, 2] : vector<1x1x128xf32> to vector<1xf32>
    %88 = vector.shape_cast %87 : vector<1xf32> to vector<1x1x1xf32>
    %89 = vector.extract %88[0, 0, 0] : f32 from vector<1x1x1xf32>
    %90 = arith.maximumf %85, %89 : f32
    %91 = vector.broadcast %90 : f32 to vector<16x16xf32>
    %92 = arith.cmpf oeq, %73, %91 : vector<16x16xf32>
    %cst_25 = arith.constant 0xFF800000 : f32
    %93 = vector.broadcast %cst_25 : f32 to vector<16x16xf32>
    %94 = arith.select %92, %93, %73 : vector<16x16xi1>, vector<16x16xf32>
    %95 = vector.broadcast %90 : f32 to vector<1x128xf32>
    %96 = arith.cmpf oeq, %77, %95 : vector<1x128xf32>
    %cst_26 = arith.constant 0xFF800000 : f32
    %97 = vector.broadcast %cst_26 : f32 to vector<1x128xf32>
    %98 = arith.select %96, %97, %77 : vector<1x128xi1>, vector<1x128xf32>
    %c2_i32 = arith.constant 2 : i32
    %99 = vector.broadcast %c2_i32 : i32 to vector<1x128xi32>
    %100 = arith.cmpi eq, %18, %99 : vector<1x128xi32>
    %101 = vector.broadcast %90 : f32 to vector<1x128xf32>
    %102 = arith.select %100, %101, %81 : vector<1x128xi1>, vector<1x128xf32>
    %103 = vector.shape_cast %94 : vector<16x16xf32> to vector<1x16x16xf32>
    %cst_27 = arith.constant dense<0xFF800000> : vector<1xf32>
    %104 = vector.multi_reduction <maximumf>, %103, %cst_27 [1, 2] : vector<1x16x16xf32> to vector<1xf32>
    %105 = vector.shape_cast %104 : vector<1xf32> to vector<1x1x1xf32>
    %106 = vector.extract %105[0, 0, 0] : f32 from vector<1x1x1xf32>
    %107 = vector.shape_cast %98 : vector<1x128xf32> to vector<1x1x128xf32>
    %cst_28 = arith.constant dense<0xFF800000> : vector<1xf32>
    %108 = vector.multi_reduction <maximumf>, %107, %cst_28 [1, 2] : vector<1x1x128xf32> to vector<1xf32>
    %109 = vector.shape_cast %108 : vector<1xf32> to vector<1x1x1xf32>
    %110 = vector.extract %109[0, 0, 0] : f32 from vector<1x1x1xf32>
    %111 = arith.maximumf %106, %110 : f32
    %c3_i32 = arith.constant 3 : i32
    %112 = vector.broadcast %c3_i32 : i32 to vector<1x128xi32>
    %113 = arith.cmpi eq, %18, %112 : vector<1x128xi32>
    %114 = vector.broadcast %111 : f32 to vector<1x128xf32>
    %115 = arith.select %113, %114, %102 : vector<1x128xi1>, vector<1x128xf32>
    %c0_29 = arith.constant 0 : index
    %c0_30 = arith.constant 0 : index
    %116 = vector.load %arg8[%c0_29, %c0_30] : memref<1x128xf32, #tpu.memory_space<vmem>>, vector<1x128xf32>
    tpu.vector_store %arg8[%c0_29, %c0_30], %115 {strides = array<i32>} : memref<1x128xf32, #tpu.memory_space<vmem>>, vector<1x128xf32>,
    %117 = arith.cmpi sge, %arg1, %6 : i32
    %118 = arith.cmpi sle, %arg1, %8 : i32
    %119 = arith.andi %117, %118 : i1
    %120 = arith.extui %119 : i1 to i32
    %c0_i32_31 = arith.constant 0 : i32
    %121 = arith.cmpi ne, %120, %c0_i32_31 : i32
    scf.if %121 {
      %c0_34 = arith.constant 0 : index
      %c0_35 = arith.constant 0 : index
      %125 = vector.load %arg3[%c0_34, %c0_35] : memref<2x2xf32, #tpu.memory_space<vmem>>, vector<2x2xf32>
      %126 = tpu.iota {dimensions = array<i32: 0>} : vector<2x2xi32>
      %127 = vector.broadcast %arg0 : i32 to vector<2x2xi32>
      %128 = arith.cmpi eq, %126, %127 : vector<2x2xi32>
      %129 = tpu.iota {dimensions = array<i32: 1>} : vector<2x2xi32>
      %c0_i32_36 = arith.constant 0 : i32
      %130 = vector.broadcast %c0_i32_36 : i32 to vector<2x2xi32>
      %131 = arith.cmpi eq, %129, %130 : vector<2x2xi32>
      %132 = arith.andi %128, %131 : vector<2x2xi1>
      %cst_37 = arith.constant 0.000000e+00 : f32
      %133 = vector.broadcast %cst_37 : f32 to vector<2x2xf32>
      %134 = arith.select %132, %125, %133 : vector<2x2xi1>, vector<2x2xf32>
      %135 = vector.shape_cast %134 : vector<2x2xf32> to vector<1x2x2xf32>
      %cst_38 = arith.constant dense<0.000000e+00> : vector<1xf32>
      %136 = vector.multi_reduction <add>, %135, %cst_38 [1, 2] : vector<1x2x2xf32> to vector<1xf32>
      %137 = vector.shape_cast %136 : vector<1xf32> to vector<1x1x1xf32>
      %138 = vector.extract %137[0, 0, 0] : f32 from vector<1x1x1xf32>
      %c1_i32_39 = arith.constant 1 : i32
      %139 = vector.broadcast %c1_i32_39 : i32 to vector<2x2xi32>
      %140 = arith.cmpi eq, %129, %139 : vector<2x2xi32>
      %141 = arith.andi %128, %140 : vector<2x2xi1>
      %cst_40 = arith.constant 0.000000e+00 : f32
      %142 = vector.broadcast %cst_40 : f32 to vector<2x2xf32>
      %143 = arith.select %141, %125, %142 : vector<2x2xi1>, vector<2x2xf32>
      %144 = vector.shape_cast %143 : vector<2x2xf32> to vector<1x2x2xf32>
      %cst_41 = arith.constant dense<0.000000e+00> : vector<1xf32>
      %145 = vector.multi_reduction <add>, %144, %cst_41 [1, 2] : vector<1x2x2xf32> to vector<1xf32>
      %146 = vector.shape_cast %145 : vector<1xf32> to vector<1x1x1xf32>
      %147 = vector.extract %146[0, 0, 0] : f32 from vector<1x1x1xf32>
      %c0_42 = arith.constant 0 : index
      %c0_43 = arith.constant 0 : index
      %c0_44 = arith.constant 0 : index
      %c0_45 = arith.constant 0 : index
      %148 = vector.load %arg5[%c0_42, %c0_43, %c0_44, %c0_45] : memref<1x2x16x16xf32, #tpu.memory_space<vmem>>, vector<1x1x16x16xf32>
      %149 = vector.shape_cast %148 : vector<1x1x16x16xf32> to vector<16x16xf32>
      %c0_46 = arith.constant 0 : index
      %c1_47 = arith.constant 1 : index
      %c0_48 = arith.constant 0 : index
      %c0_49 = arith.constant 0 : index
      %150 = vector.load %arg5[%c0_46, %c1_47, %c0_48, %c0_49] : memref<1x2x16x16xf32, #tpu.memory_space<vmem>>, vector<1x1x16x16xf32>
      %151 = vector.shape_cast %150 : vector<1x1x16x16xf32> to vector<16x16xf32>
      %152 = arith.sitofp %16 : vector<16x1xi32> to vector<16x1xf32>
      %153 = arith.sitofp %17 : vector<1x16xi32> to vector<1x16xf32>
      %cst_50 = arith.constant 0.0666666701 : f32
      %154 = vector.broadcast %cst_50 : f32 to vector<16x1xf32>
      %155 = arith.mulf %152, %154 : vector<16x1xf32>
      %156 = vector.broadcast %138 : f32 to vector<16x1xf32>
      %157 = arith.subf %156, %155 : vector<16x1xf32>
      %cst_51 = arith.constant 0.0666666701 : f32
      %158 = vector.broadcast %cst_51 : f32 to vector<1x16xf32>
      %159 = arith.mulf %153, %158 : vector<1x16xf32>
      %160 = vector.broadcast %147 : f32 to vector<1x16xf32>
      %161 = arith.subf %160, %159 : vector<1x16xf32>
      %162 = vector.broadcast %157 : vector<16x1xf32> to vector<16x16xf32>
      %163 = arith.subf %149, %162 : vector<16x16xf32>
      %164 = vector.broadcast %161 : vector<1x16xf32> to vector<16x16xf32>
      %165 = arith.subf %151, %164 : vector<16x16xf32>
      %166 = math.absf %163 : vector<16x16xf32>
      %cst_52 = arith.constant 1.000000e+00 : f32
      %167 = vector.broadcast %cst_52 : f32 to vector<16x16xf32>
      %168 = arith.cmpf olt, %166, %167 : vector<16x16xf32>
      %cst_53 = arith.constant 5.000000e-01 : f32
      %169 = vector.broadcast %cst_53 : f32 to vector<16x16xf32>
      %170 = arith.mulf %169, %163 : vector<16x16xf32>
      %171 = arith.mulf %170, %163 : vector<16x16xf32>
      %cst_54 = arith.constant 5.000000e-01 : f32
      %172 = vector.broadcast %cst_54 : f32 to vector<16x16xf32>
      %173 = arith.subf %166, %172 : vector<16x16xf32>
      %174 = arith.select %168, %171, %173 : vector<16x16xi1>, vector<16x16xf32>
      %175 = math.absf %165 : vector<16x16xf32>
      %cst_55 = arith.constant 1.000000e+00 : f32
      %176 = vector.broadcast %cst_55 : f32 to vector<16x16xf32>
      %177 = arith.cmpf olt, %175, %176 : vector<16x16xf32>
      %cst_56 = arith.constant 5.000000e-01 : f32
      %178 = vector.broadcast %cst_56 : f32 to vector<16x16xf32>
      %179 = arith.mulf %178, %165 : vector<16x16xf32>
      %180 = arith.mulf %179, %165 : vector<16x16xf32>
      %cst_57 = arith.constant 5.000000e-01 : f32
      %181 = vector.broadcast %cst_57 : f32 to vector<16x16xf32>
      %182 = arith.subf %175, %181 : vector<16x16xf32>
      %183 = arith.select %177, %180, %182 : vector<16x16xi1>, vector<16x16xf32>
      %184 = arith.addf %174, %183 : vector<16x16xf32>
      %c0_58 = arith.constant 0 : index
      %c0_59 = arith.constant 0 : index
      %185 = vector.load %arg9[%c0_58, %c0_59] : memref<1x128xf32, #tpu.memory_space<vmem>>, vector<1x128xf32>
      %c0_60 = arith.constant 0 : index
      %c0_61 = arith.constant 0 : index
      %186 = vector.load %arg10[%c0_60, %c0_61] : memref<1x128xf32, #tpu.memory_space<vmem>>, vector<1x128xf32>
      %c-1_i32 = arith.constant -1 : i32
      %187 = arith.addi %2, %c-1_i32 : i32
      %c0_i32_62 = arith.constant 0 : i32
      %188 = arith.cmpi sge, %187, %c0_i32_62 : i32
      %c16_i32_63 = arith.constant 16 : i32
      %189 = arith.cmpi slt, %187, %c16_i32_63 : i32
      %190 = arith.andi %188, %189 : i1
      %191 = vector.broadcast %187 : i32 to vector<16x1xi32>
      %192 = arith.cmpi eq, %16, %191 : vector<16x1xi32>
      %193 = vector.broadcast %190 : i1 to vector<16x1xi1>
      %194 = arith.andi %192, %193 : vector<16x1xi1>
      %c-1_i32_64 = arith.constant -1 : i32
      %195 = arith.addi %4, %c-1_i32_64 : i32
      %196 = vector.broadcast %195 : i32 to vector<1x16xi32>
      %197 = arith.cmpi eq, %17, %196 : vector<1x16xi32>
      %198 = vector.broadcast %194 : vector<16x1xi1> to vector<16x16xi1>
      %199 = vector.broadcast %197 : vector<1x16xi1> to vector<16x16xi1>
      %200 = arith.andi %198, %199 : vector<16x16xi1>
      %cst_65 = arith.constant 0xFF800000 : f32
      %201 = vector.broadcast %cst_65 : f32 to vector<16x16xf32>
      %202 = arith.select %200, %13, %201 : vector<16x16xi1>, vector<16x16xf32>
      %203 = vector.shape_cast %202 : vector<16x16xf32> to vector<1x16x16xf32>
      %cst_66 = arith.constant dense<0xFF800000> : vector<1xf32>
      %204 = vector.multi_reduction <maximumf>, %203, %cst_66 [1, 2] : vector<1x16x16xf32> to vector<1xf32>
      %205 = vector.shape_cast %204 : vector<1xf32> to vector<1x1x1xf32>
      %206 = vector.extract %205[0, 0, 0] : f32 from vector<1x1x1xf32>
      %cst_67 = arith.constant 0.000000e+00 : f32
      %207 = vector.broadcast %cst_67 : f32 to vector<16x16xf32>
      %208 = arith.select %200, %184, %207 : vector<16x16xi1>, vector<16x16xf32>
      %209 = vector.shape_cast %208 : vector<16x16xf32> to vector<1x16x16xf32>
      %cst_68 = arith.constant dense<0.000000e+00> : vector<1xf32>
      %210 = vector.multi_reduction <add>, %209, %cst_68 [1, 2] : vector<1x16x16xf32> to vector<1xf32>
      %211 = vector.shape_cast %210 : vector<1xf32> to vector<1x1x1xf32>
      %212 = vector.extract %211[0, 0, 0] : f32 from vector<1x1x1xf32>
      %c0_i32_69 = arith.constant 0 : i32
      %213 = vector.broadcast %c0_i32_69 : i32 to vector<1x128xi32>
      %214 = arith.cmpi eq, %18, %213 : vector<1x128xi32>
      %215 = vector.broadcast %206 : f32 to vector<1x128xf32>
      %216 = arith.maximumf %185, %215 : vector<1x128xf32>
      %217 = arith.select %214, %216, %185 : vector<1x128xi1>, vector<1x128xf32>
      %c0_i32_70 = arith.constant 0 : i32
      %218 = vector.broadcast %c0_i32_70 : i32 to vector<1x128xi32>
      %219 = arith.cmpi eq, %18, %218 : vector<1x128xi32>
      %220 = vector.broadcast %212 : f32 to vector<1x128xf32>
      %221 = arith.addf %186, %220 : vector<1x128xf32>
      %222 = arith.select %219, %221, %186 : vector<1x128xi1>, vector<1x128xf32>
      %c0_i32_71 = arith.constant 0 : i32
      %223 = arith.addi %4, %c0_i32_71 : i32
      %224 = vector.broadcast %223 : i32 to vector<1x16xi32>
      %225 = arith.cmpi eq, %17, %224 : vector<1x16xi32>
      %226 = vector.broadcast %194 : vector<16x1xi1> to vector<16x16xi1>
      %227 = vector.broadcast %225 : vector<1x16xi1> to vector<16x16xi1>
      %228 = arith.andi %226, %227 : vector<16x16xi1>
      %cst_72 = arith.constant 0xFF800000 : f32
      %229 = vector.broadcast %cst_72 : f32 to vector<16x16xf32>
      %230 = arith.select %228, %13, %229 : vector<16x16xi1>, vector<16x16xf32>
      %231 = vector.shape_cast %230 : vector<16x16xf32> to vector<1x16x16xf32>
      %cst_73 = arith.constant dense<0xFF800000> : vector<1xf32>
      %232 = vector.multi_reduction <maximumf>, %231, %cst_73 [1, 2] : vector<1x16x16xf32> to vector<1xf32>
      %233 = vector.shape_cast %232 : vector<1xf32> to vector<1x1x1xf32>
      %234 = vector.extract %233[0, 0, 0] : f32 from vector<1x1x1xf32>
      %cst_74 = arith.constant 0.000000e+00 : f32
      %235 = vector.broadcast %cst_74 : f32 to vector<16x16xf32>
      %236 = arith.select %228, %184, %235 : vector<16x16xi1>, vector<16x16xf32>
      %237 = vector.shape_cast %236 : vector<16x16xf32> to vector<1x16x16xf32>
      %cst_75 = arith.constant dense<0.000000e+00> : vector<1xf32>
      %238 = vector.multi_reduction <add>, %237, %cst_75 [1, 2] : vector<1x16x16xf32> to vector<1xf32>
      %239 = vector.shape_cast %238 : vector<1xf32> to vector<1x1x1xf32>
      %240 = vector.extract %239[0, 0, 0] : f32 from vector<1x1x1xf32>
      %c1_i32_76 = arith.constant 1 : i32
      %241 = vector.broadcast %c1_i32_76 : i32 to vector<1x128xi32>
      %242 = arith.cmpi eq, %18, %241 : vector<1x128xi32>
      %243 = vector.broadcast %234 : f32 to vector<1x128xf32>
      %244 = arith.maximumf %217, %243 : vector<1x128xf32>
      %245 = arith.select %242, %244, %217 : vector<1x128xi1>, vector<1x128xf32>
      %c1_i32_77 = arith.constant 1 : i32
      %246 = vector.broadcast %c1_i32_77 : i32 to vector<1x128xi32>
      %247 = arith.cmpi eq, %18, %246 : vector<1x128xi32>
      %248 = vector.broadcast %240 : f32 to vector<1x128xf32>
      %249 = arith.addf %222, %248 : vector<1x128xf32>
      %250 = arith.select %247, %249, %222 : vector<1x128xi1>, vector<1x128xf32>
      %c1_i32_78 = arith.constant 1 : i32
      %251 = arith.addi %4, %c1_i32_78 : i32
      %252 = vector.broadcast %251 : i32 to vector<1x16xi32>
      %253 = arith.cmpi eq, %17, %252 : vector<1x16xi32>
      %254 = vector.broadcast %194 : vector<16x1xi1> to vector<16x16xi1>
      %255 = vector.broadcast %253 : vector<1x16xi1> to vector<16x16xi1>
      %256 = arith.andi %254, %255 : vector<16x16xi1>
      %cst_79 = arith.constant 0xFF800000 : f32
      %257 = vector.broadcast %cst_79 : f32 to vector<16x16xf32>
      %258 = arith.select %256, %13, %257 : vector<16x16xi1>, vector<16x16xf32>
      %259 = vector.shape_cast %258 : vector<16x16xf32> to vector<1x16x16xf32>
      %cst_80 = arith.constant dense<0xFF800000> : vector<1xf32>
      %260 = vector.multi_reduction <maximumf>, %259, %cst_80 [1, 2] : vector<1x16x16xf32> to vector<1xf32>
      %261 = vector.shape_cast %260 : vector<1xf32> to vector<1x1x1xf32>
      %262 = vector.extract %261[0, 0, 0] : f32 from vector<1x1x1xf32>
      %cst_81 = arith.constant 0.000000e+00 : f32
      %263 = vector.broadcast %cst_81 : f32 to vector<16x16xf32>
      %264 = arith.select %256, %184, %263 : vector<16x16xi1>, vector<16x16xf32>
      %265 = vector.shape_cast %264 : vector<16x16xf32> to vector<1x16x16xf32>
      %cst_82 = arith.constant dense<0.000000e+00> : vector<1xf32>
      %266 = vector.multi_reduction <add>, %265, %cst_82 [1, 2] : vector<1x16x16xf32> to vector<1xf32>
      %267 = vector.shape_cast %266 : vector<1xf32> to vector<1x1x1xf32>
      %268 = vector.extract %267[0, 0, 0] : f32 from vector<1x1x1xf32>
      %c2_i32_83 = arith.constant 2 : i32
      %269 = vector.broadcast %c2_i32_83 : i32 to vector<1x128xi32>
      %270 = arith.cmpi eq, %18, %269 : vector<1x128xi32>
      %271 = vector.broadcast %262 : f32 to vector<1x128xf32>
      %272 = arith.maximumf %245, %271 : vector<1x128xf32>
      %273 = arith.select %270, %272, %245 : vector<1x128xi1>, vector<1x128xf32>
      %c2_i32_84 = arith.constant 2 : i32
      %274 = vector.broadcast %c2_i32_84 : i32 to vector<1x128xi32>
      %275 = arith.cmpi eq, %18, %274 : vector<1x128xi32>
      %276 = vector.broadcast %268 : f32 to vector<1x128xf32>
      %277 = arith.addf %250, %276 : vector<1x128xf32>
      %278 = arith.select %275, %277, %250 : vector<1x128xi1>, vector<1x128xf32>
      %c0_i32_85 = arith.constant 0 : i32
      %279 = arith.addi %2, %c0_i32_85 : i32
      %c0_i32_86 = arith.constant 0 : i32
      %280 = arith.cmpi sge, %279, %c0_i32_86 : i32
      %c16_i32_87 = arith.constant 16 : i32
      %281 = arith.cmpi slt, %279, %c16_i32_87 : i32
      %282 = arith.andi %280, %281 : i1
      %283 = vector.broadcast %279 : i32 to vector<16x1xi32>
      %284 = arith.cmpi eq, %16, %283 : vector<16x1xi32>
      %285 = vector.broadcast %282 : i1 to vector<16x1xi1>
      %286 = arith.andi %284, %285 : vector<16x1xi1>
      %c-1_i32_88 = arith.constant -1 : i32
      %287 = arith.addi %4, %c-1_i32_88 : i32
      %288 = vector.broadcast %287 : i32 to vector<1x16xi32>
      %289 = arith.cmpi eq, %17, %288 : vector<1x16xi32>
      %290 = vector.broadcast %286 : vector<16x1xi1> to vector<16x16xi1>
      %291 = vector.broadcast %289 : vector<1x16xi1> to vector<16x16xi1>
      %292 = arith.andi %290, %291 : vector<16x16xi1>
      %cst_89 = arith.constant 0xFF800000 : f32
      %293 = vector.broadcast %cst_89 : f32 to vector<16x16xf32>
      %294 = arith.select %292, %13, %293 : vector<16x16xi1>, vector<16x16xf32>
      %295 = vector.shape_cast %294 : vector<16x16xf32> to vector<1x16x16xf32>
      %cst_90 = arith.constant dense<0xFF800000> : vector<1xf32>
      %296 = vector.multi_reduction <maximumf>, %295, %cst_90 [1, 2] : vector<1x16x16xf32> to vector<1xf32>
      %297 = vector.shape_cast %296 : vector<1xf32> to vector<1x1x1xf32>
      %298 = vector.extract %297[0, 0, 0] : f32 from vector<1x1x1xf32>
      %cst_91 = arith.constant 0.000000e+00 : f32
      %299 = vector.broadcast %cst_91 : f32 to vector<16x16xf32>
      %300 = arith.select %292, %184, %299 : vector<16x16xi1>, vector<16x16xf32>
      %301 = vector.shape_cast %300 : vector<16x16xf32> to vector<1x16x16xf32>
      %cst_92 = arith.constant dense<0.000000e+00> : vector<1xf32>
      %302 = vector.multi_reduction <add>, %301, %cst_92 [1, 2] : vector<1x16x16xf32> to vector<1xf32>
      %303 = vector.shape_cast %302 : vector<1xf32> to vector<1x1x1xf32>
      %304 = vector.extract %303[0, 0, 0] : f32 from vector<1x1x1xf32>
      %c3_i32_93 = arith.constant 3 : i32
      %305 = vector.broadcast %c3_i32_93 : i32 to vector<1x128xi32>
      %306 = arith.cmpi eq, %18, %305 : vector<1x128xi32>
      %307 = vector.broadcast %298 : f32 to vector<1x128xf32>
      %308 = arith.maximumf %273, %307 : vector<1x128xf32>
      %309 = arith.select %306, %308, %273 : vector<1x128xi1>, vector<1x128xf32>
      %c3_i32_94 = arith.constant 3 : i32
      %310 = vector.broadcast %c3_i32_94 : i32 to vector<1x128xi32>
      %311 = arith.cmpi eq, %18, %310 : vector<1x128xi32>
      %312 = vector.broadcast %304 : f32 to vector<1x128xf32>
      %313 = arith.addf %278, %312 : vector<1x128xf32>
      %314 = arith.select %311, %313, %278 : vector<1x128xi1>, vector<1x128xf32>
      %c0_i32_95 = arith.constant 0 : i32
      %315 = arith.addi %4, %c0_i32_95 : i32
      %316 = vector.broadcast %315 : i32 to vector<1x16xi32>
      %317 = arith.cmpi eq, %17, %316 : vector<1x16xi32>
      %318 = vector.broadcast %286 : vector<16x1xi1> to vector<16x16xi1>
      %319 = vector.broadcast %317 : vector<1x16xi1> to vector<16x16xi1>
      %320 = arith.andi %318, %319 : vector<16x16xi1>
      %cst_96 = arith.constant 0xFF800000 : f32
      %321 = vector.broadcast %cst_96 : f32 to vector<16x16xf32>
      %322 = arith.select %320, %13, %321 : vector<16x16xi1>, vector<16x16xf32>
      %323 = vector.shape_cast %322 : vector<16x16xf32> to vector<1x16x16xf32>
      %cst_97 = arith.constant dense<0xFF800000> : vector<1xf32>
      %324 = vector.multi_reduction <maximumf>, %323, %cst_97 [1, 2] : vector<1x16x16xf32> to vector<1xf32>
      %325 = vector.shape_cast %324 : vector<1xf32> to vector<1x1x1xf32>
      %326 = vector.extract %325[0, 0, 0] : f32 from vector<1x1x1xf32>
      %cst_98 = arith.constant 0.000000e+00 : f32
      %327 = vector.broadcast %cst_98 : f32 to vector<16x16xf32>
      %328 = arith.select %320, %184, %327 : vector<16x16xi1>, vector<16x16xf32>
      %329 = vector.shape_cast %328 : vector<16x16xf32> to vector<1x16x16xf32>
      %cst_99 = arith.constant dense<0.000000e+00> : vector<1xf32>
      %330 = vector.multi_reduction <add>, %329, %cst_99 [1, 2] : vector<1x16x16xf32> to vector<1xf32>
      %331 = vector.shape_cast %330 : vector<1xf32> to vector<1x1x1xf32>
      %332 = vector.extract %331[0, 0, 0] : f32 from vector<1x1x1xf32>
      %c4_i32 = arith.constant 4 : i32
      %333 = vector.broadcast %c4_i32 : i32 to vector<1x128xi32>
      %334 = arith.cmpi eq, %18, %333 : vector<1x128xi32>
      %335 = vector.broadcast %326 : f32 to vector<1x128xf32>
      %336 = arith.maximumf %309, %335 : vector<1x128xf32>
      %337 = arith.select %334, %336, %309 : vector<1x128xi1>, vector<1x128xf32>
      %c4_i32_100 = arith.constant 4 : i32
      %338 = vector.broadcast %c4_i32_100 : i32 to vector<1x128xi32>
      %339 = arith.cmpi eq, %18, %338 : vector<1x128xi32>
      %340 = vector.broadcast %332 : f32 to vector<1x128xf32>
      %341 = arith.addf %314, %340 : vector<1x128xf32>
      %342 = arith.select %339, %341, %314 : vector<1x128xi1>, vector<1x128xf32>
      %c1_i32_101 = arith.constant 1 : i32
      %343 = arith.addi %4, %c1_i32_101 : i32
      %344 = vector.broadcast %343 : i32 to vector<1x16xi32>
      %345 = arith.cmpi eq, %17, %344 : vector<1x16xi32>
      %346 = vector.broadcast %286 : vector<16x1xi1> to vector<16x16xi1>
      %347 = vector.broadcast %345 : vector<1x16xi1> to vector<16x16xi1>
      %348 = arith.andi %346, %347 : vector<16x16xi1>
      %cst_102 = arith.constant 0xFF800000 : f32
      %349 = vector.broadcast %cst_102 : f32 to vector<16x16xf32>
      %350 = arith.select %348, %13, %349 : vector<16x16xi1>, vector<16x16xf32>
      %351 = vector.shape_cast %350 : vector<16x16xf32> to vector<1x16x16xf32>
      %cst_103 = arith.constant dense<0xFF800000> : vector<1xf32>
      %352 = vector.multi_reduction <maximumf>, %351, %cst_103 [1, 2] : vector<1x16x16xf32> to vector<1xf32>
      %353 = vector.shape_cast %352 : vector<1xf32> to vector<1x1x1xf32>
      %354 = vector.extract %353[0, 0, 0] : f32 from vector<1x1x1xf32>
      %cst_104 = arith.constant 0.000000e+00 : f32
      %355 = vector.broadcast %cst_104 : f32 to vector<16x16xf32>
      %356 = arith.select %348, %184, %355 : vector<16x16xi1>, vector<16x16xf32>
      %357 = vector.shape_cast %356 : vector<16x16xf32> to vector<1x16x16xf32>
      %cst_105 = arith.constant dense<0.000000e+00> : vector<1xf32>
      %358 = vector.multi_reduction <add>, %357, %cst_105 [1, 2] : vector<1x16x16xf32> to vector<1xf32>
      %359 = vector.shape_cast %358 : vector<1xf32> to vector<1x1x1xf32>
      %360 = vector.extract %359[0, 0, 0] : f32 from vector<1x1x1xf32>
      %c5_i32 = arith.constant 5 : i32
      %361 = vector.broadcast %c5_i32 : i32 to vector<1x128xi32>
      %362 = arith.cmpi eq, %18, %361 : vector<1x128xi32>
      %363 = vector.broadcast %354 : f32 to vector<1x128xf32>
      %364 = arith.maximumf %337, %363 : vector<1x128xf32>
      %365 = arith.select %362, %364, %337 : vector<1x128xi1>, vector<1x128xf32>
      %c5_i32_106 = arith.constant 5 : i32
      %366 = vector.broadcast %c5_i32_106 : i32 to vector<1x128xi32>
      %367 = arith.cmpi eq, %18, %366 : vector<1x128xi32>
      %368 = vector.broadcast %360 : f32 to vector<1x128xf32>
      %369 = arith.addf %342, %368 : vector<1x128xf32>
      %370 = arith.select %367, %369, %342 : vector<1x128xi1>, vector<1x128xf32>
      %c1_i32_107 = arith.constant 1 : i32
      %371 = arith.addi %2, %c1_i32_107 : i32
      %c0_i32_108 = arith.constant 0 : i32
      %372 = arith.cmpi sge, %371, %c0_i32_108 : i32
      %c16_i32_109 = arith.constant 16 : i32
      %373 = arith.cmpi slt, %371, %c16_i32_109 : i32
      %374 = arith.andi %372, %373 : i1
      %375 = vector.broadcast %371 : i32 to vector<16x1xi32>
      %376 = arith.cmpi eq, %16, %375 : vector<16x1xi32>
      %377 = vector.broadcast %374 : i1 to vector<16x1xi1>
      %378 = arith.andi %376, %377 : vector<16x1xi1>
      %c-1_i32_110 = arith.constant -1 : i32
      %379 = arith.addi %4, %c-1_i32_110 : i32
      %380 = vector.broadcast %379 : i32 to vector<1x16xi32>
      %381 = arith.cmpi eq, %17, %380 : vector<1x16xi32>
      %382 = vector.broadcast %378 : vector<16x1xi1> to vector<16x16xi1>
      %383 = vector.broadcast %381 : vector<1x16xi1> to vector<16x16xi1>
      %384 = arith.andi %382, %383 : vector<16x16xi1>
      %cst_111 = arith.constant 0xFF800000 : f32
      %385 = vector.broadcast %cst_111 : f32 to vector<16x16xf32>
      %386 = arith.select %384, %13, %385 : vector<16x16xi1>, vector<16x16xf32>
      %387 = vector.shape_cast %386 : vector<16x16xf32> to vector<1x16x16xf32>
      %cst_112 = arith.constant dense<0xFF800000> : vector<1xf32>
      %388 = vector.multi_reduction <maximumf>, %387, %cst_112 [1, 2] : vector<1x16x16xf32> to vector<1xf32>
      %389 = vector.shape_cast %388 : vector<1xf32> to vector<1x1x1xf32>
      %390 = vector.extract %389[0, 0, 0] : f32 from vector<1x1x1xf32>
      %cst_113 = arith.constant 0.000000e+00 : f32
      %391 = vector.broadcast %cst_113 : f32 to vector<16x16xf32>
      %392 = arith.select %384, %184, %391 : vector<16x16xi1>, vector<16x16xf32>
      %393 = vector.shape_cast %392 : vector<16x16xf32> to vector<1x16x16xf32>
      %cst_114 = arith.constant dense<0.000000e+00> : vector<1xf32>
      %394 = vector.multi_reduction <add>, %393, %cst_114 [1, 2] : vector<1x16x16xf32> to vector<1xf32>
      %395 = vector.shape_cast %394 : vector<1xf32> to vector<1x1x1xf32>
      %396 = vector.extract %395[0, 0, 0] : f32 from vector<1x1x1xf32>
      %c6_i32 = arith.constant 6 : i32
      %397 = vector.broadcast %c6_i32 : i32 to vector<1x128xi32>
      %398 = arith.cmpi eq, %18, %397 : vector<1x128xi32>
      %399 = vector.broadcast %390 : f32 to vector<1x128xf32>
      %400 = arith.maximumf %365, %399 : vector<1x128xf32>
      %401 = arith.select %398, %400, %365 : vector<1x128xi1>, vector<1x128xf32>
      %c6_i32_115 = arith.constant 6 : i32
      %402 = vector.broadcast %c6_i32_115 : i32 to vector<1x128xi32>
      %403 = arith.cmpi eq, %18, %402 : vector<1x128xi32>
      %404 = vector.broadcast %396 : f32 to vector<1x128xf32>
      %405 = arith.addf %370, %404 : vector<1x128xf32>
      %406 = arith.select %403, %405, %370 : vector<1x128xi1>, vector<1x128xf32>
      %c0_i32_116 = arith.constant 0 : i32
      %407 = arith.addi %4, %c0_i32_116 : i32
      %408 = vector.broadcast %407 : i32 to vector<1x16xi32>
      %409 = arith.cmpi eq, %17, %408 : vector<1x16xi32>
      %410 = vector.broadcast %378 : vector<16x1xi1> to vector<16x16xi1>
      %411 = vector.broadcast %409 : vector<1x16xi1> to vector<16x16xi1>
      %412 = arith.andi %410, %411 : vector<16x16xi1>
      %cst_117 = arith.constant 0xFF800000 : f32
      %413 = vector.broadcast %cst_117 : f32 to vector<16x16xf32>
      %414 = arith.select %412, %13, %413 : vector<16x16xi1>, vector<16x16xf32>
      %415 = vector.shape_cast %414 : vector<16x16xf32> to vector<1x16x16xf32>
      %cst_118 = arith.constant dense<0xFF800000> : vector<1xf32>
      %416 = vector.multi_reduction <maximumf>, %415, %cst_118 [1, 2] : vector<1x16x16xf32> to vector<1xf32>
      %417 = vector.shape_cast %416 : vector<1xf32> to vector<1x1x1xf32>
      %418 = vector.extract %417[0, 0, 0] : f32 from vector<1x1x1xf32>
      %cst_119 = arith.constant 0.000000e+00 : f32
      %419 = vector.broadcast %cst_119 : f32 to vector<16x16xf32>
      %420 = arith.select %412, %184, %419 : vector<16x16xi1>, vector<16x16xf32>
      %421 = vector.shape_cast %420 : vector<16x16xf32> to vector<1x16x16xf32>
      %cst_120 = arith.constant dense<0.000000e+00> : vector<1xf32>
      %422 = vector.multi_reduction <add>, %421, %cst_120 [1, 2] : vector<1x16x16xf32> to vector<1xf32>
      %423 = vector.shape_cast %422 : vector<1xf32> to vector<1x1x1xf32>
      %424 = vector.extract %423[0, 0, 0] : f32 from vector<1x1x1xf32>
      %c7_i32 = arith.constant 7 : i32
      %425 = vector.broadcast %c7_i32 : i32 to vector<1x128xi32>
      %426 = arith.cmpi eq, %18, %425 : vector<1x128xi32>
      %427 = vector.broadcast %418 : f32 to vector<1x128xf32>
      %428 = arith.maximumf %401, %427 : vector<1x128xf32>
      %429 = arith.select %426, %428, %401 : vector<1x128xi1>, vector<1x128xf32>
      %c7_i32_121 = arith.constant 7 : i32
      %430 = vector.broadcast %c7_i32_121 : i32 to vector<1x128xi32>
      %431 = arith.cmpi eq, %18, %430 : vector<1x128xi32>
      %432 = vector.broadcast %424 : f32 to vector<1x128xf32>
      %433 = arith.addf %406, %432 : vector<1x128xf32>
      %434 = arith.select %431, %433, %406 : vector<1x128xi1>, vector<1x128xf32>
      %c1_i32_122 = arith.constant 1 : i32
      %435 = arith.addi %4, %c1_i32_122 : i32
      %436 = vector.broadcast %435 : i32 to vector<1x16xi32>
      %437 = arith.cmpi eq, %17, %436 : vector<1x16xi32>
      %438 = vector.broadcast %378 : vector<16x1xi1> to vector<16x16xi1>
      %439 = vector.broadcast %437 : vector<1x16xi1> to vector<16x16xi1>
      %440 = arith.andi %438, %439 : vector<16x16xi1>
      %cst_123 = arith.constant 0xFF800000 : f32
      %441 = vector.broadcast %cst_123 : f32 to vector<16x16xf32>
      %442 = arith.select %440, %13, %441 : vector<16x16xi1>, vector<16x16xf32>
      %443 = vector.shape_cast %442 : vector<16x16xf32> to vector<1x16x16xf32>
      %cst_124 = arith.constant dense<0xFF800000> : vector<1xf32>
      %444 = vector.multi_reduction <maximumf>, %443, %cst_124 [1, 2] : vector<1x16x16xf32> to vector<1xf32>
      %445 = vector.shape_cast %444 : vector<1xf32> to vector<1x1x1xf32>
      %446 = vector.extract %445[0, 0, 0] : f32 from vector<1x1x1xf32>
      %cst_125 = arith.constant 0.000000e+00 : f32
      %447 = vector.broadcast %cst_125 : f32 to vector<16x16xf32>
      %448 = arith.select %440, %184, %447 : vector<16x16xi1>, vector<16x16xf32>
      %449 = vector.shape_cast %448 : vector<16x16xf32> to vector<1x16x16xf32>
      %cst_126 = arith.constant dense<0.000000e+00> : vector<1xf32>
      %450 = vector.multi_reduction <add>, %449, %cst_126 [1, 2] : vector<1x16x16xf32> to vector<1xf32>
      %451 = vector.shape_cast %450 : vector<1xf32> to vector<1x1x1xf32>
      %452 = vector.extract %451[0, 0, 0] : f32 from vector<1x1x1xf32>
      %c8_i32 = arith.constant 8 : i32
      %453 = vector.broadcast %c8_i32 : i32 to vector<1x128xi32>
      %454 = arith.cmpi eq, %18, %453 : vector<1x128xi32>
      %455 = vector.broadcast %446 : f32 to vector<1x128xf32>
      %456 = arith.maximumf %429, %455 : vector<1x128xf32>
      %457 = arith.select %454, %456, %429 : vector<1x128xi1>, vector<1x128xf32>
      %c8_i32_127 = arith.constant 8 : i32
      %458 = vector.broadcast %c8_i32_127 : i32 to vector<1x128xi32>
      %459 = arith.cmpi eq, %18, %458 : vector<1x128xi32>
      %460 = vector.broadcast %452 : f32 to vector<1x128xf32>
      %461 = arith.addf %434, %460 : vector<1x128xf32>
      %462 = arith.select %459, %461, %434 : vector<1x128xi1>, vector<1x128xf32>
      %c0_128 = arith.constant 0 : index
      %c0_129 = arith.constant 0 : index
      %463 = vector.load %arg9[%c0_128, %c0_129] : memref<1x128xf32, #tpu.memory_space<vmem>>, vector<1x128xf32>
      tpu.vector_store %arg9[%c0_128, %c0_129], %457 {strides = array<i32>} : memref<1x128xf32, #tpu.memory_space<vmem>>, vector<1x128xf32>,
      %c0_130 = arith.constant 0 : index
      %c0_131 = arith.constant 0 : index
      %464 = vector.load %arg10[%c0_130, %c0_131] : memref<1x128xf32, #tpu.memory_space<vmem>>, vector<1x128xf32>
      tpu.vector_store %arg10[%c0_130, %c0_131], %462 {strides = array<i32>} : memref<1x128xf32, #tpu.memory_space<vmem>>, vector<1x128xf32>,
    } else {
    }
    %c0_i32_32 = arith.constant 0 : i32
    %122 = arith.cmpi eq, %arg1, %c0_i32_32 : i32
    %123 = arith.extui %122 : i1 to i32
    %c0_i32_33 = arith.constant 0 : i32
    %124 = arith.cmpi ne, %123, %c0_i32_33 : i32
    scf.if %124 {
      %c0_34 = arith.constant 0 : index
      %c0_35 = arith.constant 0 : index
      %125 = vector.load %arg7[%c0_34, %c0_35] : memref<1x128xf32, #tpu.memory_space<vmem>>, vector<1x128xf32>
      %126 = vector.shape_cast %125 : vector<1x128xf32> to vector<1x1x128xf32>
      %cst_36 = arith.constant dense<0xFF800000> : vector<1xf32>
      %127 = vector.multi_reduction <maximumf>, %126, %cst_36 [1, 2] : vector<1x1x128xf32> to vector<1xf32>
      %128 = vector.shape_cast %127 : vector<1xf32> to vector<1x1x1xf32>
      %129 = vector.extract %128[0, 0, 0] : f32 from vector<1x1x1xf32>
      %c4_i32 = arith.constant 4 : i32
      %130 = vector.broadcast %c4_i32 : i32 to vector<1x128xi32>
      %131 = arith.cmpi slt, %18, %130 : vector<1x128xi32>
      %c0_37 = arith.constant 0 : index
      %c0_38 = arith.constant 0 : index
      %132 = vector.load %arg8[%c0_37, %c0_38] : memref<1x128xf32, #tpu.memory_space<vmem>>, vector<1x128xf32>
      %cst_39 = arith.constant 0x7F800000 : f32
      %133 = vector.broadcast %cst_39 : f32 to vector<1x128xf32>
      %134 = arith.select %131, %132, %133 : vector<1x128xi1>, vector<1x128xf32>
      %135 = vector.shape_cast %134 : vector<1x128xf32> to vector<1x1x128xf32>
      %cst_40 = arith.constant dense<0x7F800000> : vector<1xf32>
      %136 = vector.multi_reduction <minimumf>, %135, %cst_40 [1, 2] : vector<1x1x128xf32> to vector<1xf32>
      %137 = vector.shape_cast %136 : vector<1xf32> to vector<1x1x1xf32>
      %138 = vector.extract %137[0, 0, 0] : f32 from vector<1x1x1xf32>
      %c9_i32 = arith.constant 9 : i32
      %139 = vector.broadcast %c9_i32 : i32 to vector<1x128xi32>
      %140 = arith.cmpi slt, %18, %139 : vector<1x128xi32>
      %c0_41 = arith.constant 0 : index
      %c0_42 = arith.constant 0 : index
      %141 = vector.load %arg9[%c0_41, %c0_42] : memref<1x128xf32, #tpu.memory_space<vmem>>, vector<1x128xf32>
      %142 = vector.broadcast %138 : f32 to vector<1x128xf32>
      %143 = arith.cmpf oge, %141, %142 : vector<1x128xf32>
      %144 = arith.andi %140, %143 : vector<1x128xi1>
      %c0_43 = arith.constant 0 : index
      %c0_44 = arith.constant 0 : index
      %145 = vector.load %arg10[%c0_43, %c0_44] : memref<1x128xf32, #tpu.memory_space<vmem>>, vector<1x128xf32>
      %cst_45 = arith.constant 0.000000e+00 : f32
      %146 = vector.broadcast %cst_45 : f32 to vector<1x128xf32>
      %147 = arith.select %144, %145, %146 : vector<1x128xi1>, vector<1x128xf32>
      %148 = vector.shape_cast %147 : vector<1x128xf32> to vector<1x1x128xf32>
      %cst_46 = arith.constant dense<0.000000e+00> : vector<1xf32>
      %149 = vector.multi_reduction <add>, %148, %cst_46 [1, 2] : vector<1x1x128xf32> to vector<1xf32>
      %150 = vector.shape_cast %149 : vector<1xf32> to vector<1x1x1xf32>
      %151 = vector.extract %150[0, 0, 0] : f32 from vector<1x1x1xf32>
      %152 = arith.extui %144 : vector<1x128xi1> to vector<1x128xi32>
      %153 = arith.sitofp %152 : vector<1x128xi32> to vector<1x128xf32>
      %154 = vector.shape_cast %153 : vector<1x128xf32> to vector<1x1x128xf32>
      %cst_47 = arith.constant dense<0.000000e+00> : vector<1xf32>
      %155 = vector.multi_reduction <add>, %154, %cst_47 [1, 2] : vector<1x1x128xf32> to vector<1xf32>
      %156 = vector.shape_cast %155 : vector<1xf32> to vector<1x1x1xf32>
      %157 = vector.extract %156[0, 0, 0] : f32 from vector<1x1x1xf32>
      %cst_48 = arith.constant 2.000000e+00 : f32
      %158 = arith.mulf %cst_48, %157 : f32
      %159 = tpu.iota {dimensions = array<i32: 2>} : vector<1x1x128xi32>
      %c0_i32_49 = arith.constant 0 : i32
      %160 = vector.broadcast %c0_i32_49 : i32 to vector<1x1x128xi32>
      %161 = arith.cmpi eq, %159, %160 : vector<1x1x128xi32>
      %cst_50 = arith.constant 0.000000e+00 : f32
      %162 = vector.broadcast %129 : f32 to vector<1x1x128xf32>
      %163 = vector.broadcast %cst_50 : f32 to vector<1x1x128xf32>
      %164 = arith.select %161, %162, %163 : vector<1x1x128xi1>, vector<1x1x128xf32>
      %c1_i32_51 = arith.constant 1 : i32
      %165 = vector.broadcast %c1_i32_51 : i32 to vector<1x1x128xi32>
      %166 = arith.cmpi eq, %159, %165 : vector<1x1x128xi32>
      %cst_52 = arith.constant 0.000000e+00 : f32
      %167 = vector.broadcast %151 : f32 to vector<1x1x128xf32>
      %168 = vector.broadcast %cst_52 : f32 to vector<1x1x128xf32>
      %169 = arith.select %166, %167, %168 : vector<1x1x128xi1>, vector<1x1x128xf32>
      %170 = arith.addf %164, %169 : vector<1x1x128xf32>
      %c2_i32_53 = arith.constant 2 : i32
      %171 = vector.broadcast %c2_i32_53 : i32 to vector<1x1x128xi32>
      %172 = arith.cmpi eq, %159, %171 : vector<1x1x128xi32>
      %cst_54 = arith.constant 0.000000e+00 : f32
      %173 = vector.broadcast %158 : f32 to vector<1x1x128xf32>
      %174 = vector.broadcast %cst_54 : f32 to vector<1x1x128xf32>
      %175 = arith.select %172, %173, %174 : vector<1x1x128xi1>, vector<1x1x128xf32>
      %176 = arith.addf %170, %175 : vector<1x1x128xf32>
      %c0_55 = arith.constant 0 : index
      %c0_56 = arith.constant 0 : index
      %c0_57 = arith.constant 0 : index
      %177 = vector.load %arg6[%c0_55, %c0_56, %c0_57] : memref<1x1x128xf32, #tpu.memory_space<vmem>>, vector<1x1x128xf32>
      tpu.vector_store %arg6[%c0_55, %c0_56, %c0_57], %176 {strides = array<i32>} : memref<1x1x128xf32, #tpu.memory_space<vmem>>, vector<1x1x128xf32>,
    } else {
    }
    return
  }
  func.func @transform_0(%arg0: i32, %arg1: i32, %arg2: memref<2x4xi32, #tpu.memory_space<smem>>) -> (i32, i32) {
    %c0_i32 = arith.constant 0 : i32
    %c0_i32_0 = arith.constant 0 : i32
    %c0_i32_1 = arith.constant 0 : i32
    return %c0_i32, %c0_i32_0 : i32, i32
  }
  func.func @transform_1(%arg0: i32, %arg1: i32, %arg2: memref<2x4xi32, #tpu.memory_space<smem>>) -> (i32, i32, i32, i32) {
    %c0_i32 = arith.constant 0 : i32
    %c0_i32_0 = arith.constant 0 : i32
    %c0_i32_1 = arith.constant 0 : i32
    return %arg0, %c0_i32, %arg1, %c0_i32_0 : i32, i32, i32, i32
  }
  func.func @transform_2(%arg0: i32, %arg1: i32, %arg2: memref<2x4xi32, #tpu.memory_space<smem>>) -> (i32, i32, i32, i32) {
    %0 = arith.index_cast %arg0 : i32 to index
    %c2 = arith.constant 2 : index
    %1 = memref.load %arg2[%0, %c2] : memref<2x4xi32, #tpu.memory_space<smem>>
    %2 = arith.maxsi %arg1, %1 : i32
    %3 = arith.index_cast %arg0 : i32 to index
    %c3 = arith.constant 3 : index
    %4 = memref.load %arg2[%3, %c3] : memref<2x4xi32, #tpu.memory_space<smem>>
    %5 = arith.minsi %2, %4 : i32
    %c0_i32 = arith.constant 0 : i32
    %c0_i32_0 = arith.constant 0 : i32
    %c0_i32_1 = arith.constant 0 : i32
    return %arg0, %c0_i32, %5, %c0_i32_0 : i32, i32, i32, i32
  }
  func.func @transform_3(%arg0: i32, %arg1: i32, %arg2: memref<2x4xi32, #tpu.memory_space<smem>>) -> (i32, i32, i32) {
    %c0_i32 = arith.constant 0 : i32
    %c0_i32_0 = arith.constant 0 : i32
    %c0_i32_1 = arith.constant 0 : i32
    return %arg0, %c0_i32, %c0_i32_0 : i32, i32, i32
  }
}

</mosaic_0001>

<bundles_post_ra>
// kernel: tpu_custom_call.1
= control target key start
LH: loop header
LB: loop body
LE: loop exit
PB: predicated region body
PF: predicated region fallthrough
CT: control target
= control target key end

     0   :  { %s1679_s15 = smov [#allocation7]   ;;  %s2552_s0 = inlined_call_operand.hbm [shape: s32[2,4], index: 0, kind: input, shape index: {}]   ;;  %s2553_s1 = inlined_call_operand.hbm [shape: f32[2,2], index: 1, kind: input, shape index: {}]   ;;  %s2554_s2 = inlined_call_operand.hbm [shape: f32[2,1,16,16], index: 2, kind: input, shape index: {}]   ;;  %s2555_s3 = inlined_call_operand.hbm [shape: f32[2,2,16,16], index: 3, kind: input, shape index: {}]   ;;  %s2556_s4 = inlined_call_operand.hbm [shape: f32[2,1,128], index: 4, kind: output, shape index: {}]  }
   0x1   :  { %2591 = sst [smem:[#allocation28_spill]] %s2553_s1 }
   0x2   :  { %2592 = sst [smem:[#allocation29_spill]] %s2554_s2 }
   0x3   :  { %2593 = sst [smem:[#allocation30_spill]] %s2556_s4 }
   0x4   :  { %10 = dma.hbm_to_smem %s2552_s0, 32, %s1679_s15, [#allocation6] }
   0x5   :  { %1625 = dma.done.wait [#allocation6], 32 }
   0x6   :  { %1626 = vsyncadd [#allocation6], 4294967264 }
   0x7   :  { %12 = sfence }
   0x8   :  { %13 = vsyncpa [#allocation9], 0 }
   0x9   :  { %14 = vsyncpa [#allocation12], 0 }
   0xa   :  { %16 = vsyncpa [#allocation12 + $0x1], 0 }
   0xb   :  { %17 = vsyncpa [#allocation10], 0 }
   0xc   :  { %19 = vsyncpa [#allocation10 + $0x1], 0  ;;  %s1717_s18 = smov 0   ;;  %s1719_s19 = smov 0  }
   0xd   :  { %s1721_s20 = smov 0   ;;  %s1723_s21 = smov 0  }
   0xe   :  { %s1725_s22 = smov 0   ;;  %s1727_s23 = smov 0  }
   0xf   :  { %s1729_s0 = smov 0   ;;  %s1731_s24 = smov 0  }
  0x10   :  { %s1733_s25 = smov 0  }
  0x11 LB: > { %2594 = sst [smem:[#allocation24_spill]] %s1665_s23  ;;  %s37_s26 = sadd.s32 1, %s1673_s24  ;;  %s1677_s25 = sphi %s1733_s25, %s25_s25   ;;  %s1673_s24 = sphi %s1731_s24, %s2694_s24   ;;  %s1669_s0 = sphi %s1729_s0, %s2693_s0   ;;  %s1665_s23 = sphi %s1727_s23, %s2686_s23   ;;  %s1661_s22 = sphi %s1725_s22, %s2692_s22   ;;  %s1657_s21 = sphi %s1723_s21, %s2691_s21   ;;  %s1653_s20 = sphi %s1721_s20, %s2690_s20   ;;  %s1649_s19 = sphi %s1719_s19, %s2689_s19   ;;  %s1645_s18 = sphi %s1717_s18, %s2688_s18  }
  0x12   : > { %s67_s27 = sadd.s32 1, %s1665_s23  ;;  %p39_p0 = scmp.ge.s32.totalorder %s37_s26, 2 }
  0x13   : > { %p74_p1 = scmp.ne.s32.totalorder %s1665_s23, %s1661_s22  ;;  %p2560_p2 = scmp.eq.s32.totalorder %s1677_s25, 0 }
  0x14   : > { %s1243_s28 = sshll.u32 %s1673_s24, 7  ;;  %s2696_s26 = smov (%p39_p0, %s37_s26), 0 }
  0x15   : > { %2595 = sst [smem:[#allocation25_spill]] %s2696_s26  ;;  %p1775_p3 = por %p2560_p2, %p74_p1 }
  0x16   : > { %s1779_s30 = sadd.s32 2, %s1243_s28  ;;  %s1783_s5 = ssub.s32 %s1673_s24, %s2696_s26 }
  0x17   : > { %s92_s6 = sld [smem:[#allocation7 + %s1779_s30]]  ;;  %p65_p4 = scmp.eq.s32.totalorder %s1783_s5, 0 }
  0x18   : > { %s1787_s7 = sadd.s32 3, %s1243_s28  ;;  %s1245_s9 = sshll.u32 %s2696_s26, 7 }
  0x19   : > { %s96_s8 = sld [smem:[#allocation7 + %s1787_s7]]  ;;  %s100_s11 = sadd.s32 2, %s1245_s9 }
  0x1a   : > { %s1792_s10 = scalar_select %p65_p4, %s1665_s23, %s67_s27  }
  0x1b   : > { %s104_s12 = sadd.s32 3, %s1245_s9  ;;  %s101_s13 = sld [smem:[#allocation7 + %s100_s11]] }
  0x1c   : > { %2597 = sst [smem:[#allocation26_spill]] %s1792_s10  ;;  %p2559_p7 = scmp.lt.s32.totalorder %s1677_s25, 2 }
  0x1d   : > { %p1244_p6 = scmp.lt.s32.totalorder %s92_s6, 0  ;;  %s105_s14 = sld [smem:[#allocation7 + %s104_s12]] }
  0x1e   : > { %s187_s15 = sand.u32 1, %s1677_s25   ;;  %s189_s16 = sand.u32 1, %s1665_s23  }
  0x1f   : > { %s2698_s6 = smov (%p1244_p6, %s92_s6), 0  ;;  %s1250_s17 = sshll.u32 %s189_s16, 4 }
  0x20   : > { %p97_p8 = scmp.lt.s32.totalorder %s2698_s6, %s96_s8  ;;  %s1280_s27 = sshll.u32 %s1673_s24, 8 }
  0x21   : > { %p1246_p9 = scmp.lt.s32.totalorder %s101_s13, 0  ;;  %s191_s28 = scalar_lea.vmem [#allocation11], %s1250_s17 }
  0x22   : > { %s2700_s6 = smov (!%p97_p8, %s2698_s6), %s96_s8  ;;  %s200_s26 = sshll.u32 %s191_s28, 4  ;;  %s201_s26 = int_to_ptr.vmem [resolvable:$true] %s200_s26 }
  0x23   : > { %s2702_s13 = smov (%p1246_p9, %s101_s13), 0  ;;  %s2598_s2 = sld [smem:[#allocation29_spill]] }
  0x24   : > { %p106_p10 = scmp.lt.s32.totalorder %s2702_s13, %s105_s14  ;;  %p1806_p11 = pnand %p2559_p7, %p1775_p3 }
  0x25   : > { %s1811_s4 = scalar_lea.sflag [#allocation12], %s187_s15  ;;  %s1494_s17 = scalar_lea.vmem %s201_s26, 256 }
  0x26   : > { %s2704_s13 = smov (!%p106_p10, %s2702_s13), %s105_s14  ;;  %p1483_p12 = pneg %p1806_p11 }
  0x27   : > { %s109_s16 = ssub.s32 %s2700_s6, %s2704_s13  ;;  %p1495_p13 = scmp.ne.s32.totalorder %s201_s26, %s1494_s17 }
  0x28   : > { %s110_s8 = sor.u32 %s109_s16, %s1783_s5 }
  0x29   : > { %s199_s12 = scalar_lea.hbm %s2598_s2, %s1280_s27  ;;  %p1497_p0 = pnand %p1495_p13, %p1483_p12 }
  0x2a   : > { %s1680_s27 = smov [#allocation11]  }
  0x2b   : > { %p1498_p4 = pneg %p1497_p0  ;;  %s1499_s28 = sshll.u32 %s1680_s27, 4  ;;  %s1500_s28 = int_to_ptr.vmem [resolvable:$false] %s1499_s28 }
  0x2c   : > { %s1501_s29 = scalar_lea.vmem %s1500_s28, 512  ;;  %p1502_p3 = scmp.lt.s32.totalorder %s201_s26, %s1500_s28 }
  0x2d   : > { %p1503_p6 = scmp.lt.s32.totalorder %s1501_s29, %s1494_s17 }
  0x2f   : > { %p1504_p8 = por %p1503_p6, %p1502_p3 }
  0x31   : > { %p1505_p9 = pnand %p1504_p8, %p1498_p4 }
  0x33   : > { %1508 = shalt.err (!%p1505_p9)
}
  0x34   : > { %s2564_s14 = smov 128   ;;  %s2565_s5 = smov 8  }
  0x35   : > { %1370 = dma.hbm_to_vmem [thread:$0]  (!%p1806_p11), %s199_s12, 256, %s201_s26, %s1811_s4, %s2564_s14, %s2564_s14, %s2565_s5  }
  0x36   : > { %p111_p10 = scmp.eq.s32.totalorder %s110_s8, 0  ;;  %s1822_s6 = sadd.s32 4294967295, %s1677_s25  }
  0x37   : > { %p80_p12 = scmp.ne.s32.totalorder %s1661_s22, %s1657_s21  ;;  %p2561_p13 = scmp.eq.s32.totalorder %s1822_s6, 0 }
  0x38   : > { %s1242_s10 = sadd.s32 4294967294, %s1677_s25   ;;  %s113_s13 = sadd.s32 1, %s1653_s20 }
  0x39   : > { %p1834_p0 = por %p2561_p13, %p80_p12  ;;  %p126_p11 = scmp.ne.s32.totalorder %s1649_s19, %s1645_s18 }
  0x3a   : > { %s1841_s15 = scalar_select %p111_p10, %s1653_s20, %s113_s13  }
  0x3b   : > { %s2600_s26 = scalar_select %p1834_p0, 1, 0 }
  0x3c   : > { %2601 = sst [smem:[#allocation27_spill]] %s1841_s15  ;;  %p120_p4 = scmp.ne.s32.totalorder %s1653_s20, %s1649_s19 }
  0x3d   : > { %p1847_p3 = por %p126_p11, %p2561_p13  ;;  %p150_p6 = scmp.eq.s32.totalorder %s1822_s6, 1 }
  0x3e   : > { %p156_p8 = scmp.eq.s32.totalorder %s1242_s10, 1  ;;  %p1247_p9 = scmp.ge.s32.totalorder %s1677_s25, 1 }
  0x3f   : > { %s2602_s9 = scalar_select %p1847_p3, 1, 0 }
  0x40   : > { %p163_p5 = scmp.lt.s32.totalorder %s1677_s25, 3  ;;  %p1857_p7 = por %p150_p6, %p74_p1 }
  0x41   : > { %p1864_p2 = por %p156_p8, %p80_p12  ;;  %p2606_p11 = scmp.eq.s32.totalorder %s1677_s25, 0 }
  0x42   : > { %s2603_s11 = scalar_select %p1857_p7, 1, 0 }
  0x43   : > { %s2604_s18 = scalar_select %p1864_p2, 1, 0 }
  0x44   : > { %p1868_p10 = pnand %p1247_p9, %p163_p5  ;;  %p1874_p13 = por %p120_p4, %p2606_p11 }
  0x45   : > { %s1683_s8 = smov [#allocation8]   ;;  %p2608_p12 = scmp.eq.s32.totalorder %s1822_s6, 0 }
  0x46   : > { %s2605_s12 = scalar_select %p1868_p10, 1, 0 }
  0x47   : > { %p1363_p1 = pneg %p1868_p10  ;;  %s176_s17 = sshll.u32 %s1683_s8, 4  ;;  %s177_s17 = int_to_ptr.vmem [resolvable:$true] %s176_s17 }
  0x48   : > { %s1352_s27 = scalar_select %p1874_p13, [#allocation7], [#allocation15] }
  0x49   : > { %p1364_p6 = pnand %p1363_p1, %p2608_p12  ;;  %s1520_s28 = scalar_lea.vmem %s177_s17, 32 }
  0x4a   : > { %p1521_p8 = scmp.ne.s32.totalorder %s177_s17, %s1520_s28  ;;  %p1528_p7 = scmp.lt.s32.totalorder %s177_s17, %s177_s17 }
  0x4b   : > { %p1511_p5 = pneg %p1364_p6  ;;  %p1529_p4 = scmp.lt.s32.totalorder %s1520_s28, %s1520_s28 }
  0x4d   : > { %p1523_p9 = pnand %p1521_p8, %p1511_p5  ;;  %p1530_p11 = por %p1529_p4, %p1528_p7 }
  0x4f   : > { %p1524_p2 = pneg %p1523_p9 }
  0x51   : > { %p1531_p3 = pnand %p1530_p11, %p1524_p2 }
  0x53   : > { %1534 = shalt.err (!%p1531_p3)
}
  0x54   : > { %s2609_s1 = sld [smem:[#allocation28_spill]]  ;;  %s2706_s30 = smov (!%p1874_p13, %s1779_s30), 0 }
  0x55   : > { %p2610_p2 = scmp.lt.s32.totalorder %s1677_s25, 2  ;;  %s212_s8 = sand.u32 1, %s1653_s20  }
  0x56   : > { %s1354_s13 = scalar_select %p1874_p13, [#allocation7], [#allocation16] }
  0x57   : > { %s2708_s27 = smov (!%p2610_p2, %s1352_s27), [#allocation17]  ;;  %p2611_p7 = pmov %p2610_p2 }
  0x58   : > { %s2712_s7 = smov (!%p1874_p13, %s1787_s7), 0  ;;  %p2612_p3 = pmov %p2610_p2 }
  0x59   : > { %s2710_s30 = smov (!%p2611_p7, %s2706_s30), 0  ;;  %p2613_p1 = pmov %p2610_p2 }
  0x5a   : > { %1366 = dma.hbm_to_vmem [thread:$0]  (!%p1364_p6), %s2609_s1, 32, %s177_s17, [#allocation9]  }
  0x5b   : > { %s217_s28 = sld [smem:[%s2708_s27 + %s2710_s30]]  ;;  %s2714_s13 = smov (!%p2612_p3, %s1354_s13), [#allocation18] }
  0x5c   : > { %s2716_s7 = smov (!%p2613_p1, %s2712_s7), 0  ;;  %p2614_p12 = pmov %p2613_p1 }
  0x5d   : > { %s1253_s29 = sshll.u32 %s212_s8, 5  ;;  %s221_s10 = sld [smem:[%s2714_s13 + %s2716_s7]] }
  0x5e   : > { %p1908_p6 = pnand %p2614_p12, %p1874_p13  ;;  %s1257_s14 = sshll.u32 %s1673_s24, 2 }
  0x5f   : > { %s214_s30 = scalar_lea.vmem [#allocation13], %s1253_s29 }
  0x60   : > { %s232_s27 = sshll.u32 %s214_s30, 4  ;;  %p1537_p9 = pneg %p1908_p6  ;;  %s1913_s27 = int_to_ptr.vmem [resolvable:$true] %s232_s27 }
  0x61   : > { %p1255_p5 = scmp.lt.s32.totalorder %s217_s28, 0 }
  0x63   : > { %s2718_s28 = smov (%p1255_p5, %s217_s28), 0 }
  0x64   : > { %p222_p8 = scmp.lt.s32.totalorder %s2718_s28, %s221_s10 }
  0x66   : > { %s2720_s28 = smov (!%p222_p8, %s2718_s28), %s221_s10 }
  0x67   : > { %s1256_s5 = sshll.u32 %s2720_s28, 1 }
  0x68   : > { %s229_s1 = sadd.s32 %s1257_s14, %s1256_s5  ;;  %s1540_s14 = scalar_lea.hbm %s2555_s3, 1024 }
  0x69   : > { %s1258_s16 = sshll.u32 %s229_s1, 7 }
  0x6a   : > { %s1918_s15 = scalar_lea.hbm %s2555_s3, %s1258_s16 }
  0x6b   : > { %s1535_s7 = scalar_lea.hbm %s1918_s15, 512  ;;  %p1541_p2 = scmp.lt.s32.totalorder %s1918_s15, %s2555_s3 }
  0x6c   : > { %p1536_p13 = scmp.ne.s32.totalorder %s1918_s15, %s1535_s7  ;;  %p1542_p7 = scmp.lt.s32.totalorder %s1540_s14, %s1535_s7 }
  0x6e   : > { %p1538_p4 = pnand %p1537_p9, %p1536_p13  ;;  %p1543_p3 = por %p1542_p7, %p1541_p2 }
  0x70   : > { %p1539_p11 = pneg %p1538_p4 }
  0x72   : > { %p1544_p1 = pnand %p1543_p3, %p1539_p11 }
  0x74   : > { %1547 = shalt.err (!%p1544_p1)
}
  0x75   : > { %s1548_s2 = scalar_lea.vmem %s1913_s27, 512  ;;  %s1684_s23 = smov [#allocation13]  }
  0x76   : > { %p1549_p12 = scmp.ne.s32.totalorder %s1913_s27, %s1548_s2  ;;  %s1553_s28 = sshll.u32 %s1684_s23, 4  ;;  %s1554_s28 = int_to_ptr.vmem [resolvable:$false] %s1553_s28 }
  0x77   : > { %s1555_s29 = scalar_lea.vmem %s1554_s28, 1024  ;;  %p1556_p13 = scmp.lt.s32.totalorder %s1913_s27, %s1554_s28 }
  0x78   : > { %p1551_p5 = pnand %p1549_p12, %p1537_p9  ;;  %p1557_p4 = scmp.lt.s32.totalorder %s1555_s29, %s1548_s2 }
  0x7a   : > { %p1552_p8 = pneg %p1551_p5  ;;  %p1558_p0 = por %p1557_p4, %p1556_p13 }
  0x7c   : > { %p1559_p10 = pnand %p1558_p0, %p1552_p8 }
  0x7e   : > { %1562 = shalt.err (!%p1559_p10)
}
  0x7f   : > { %s2616_s10 = smov 8   ;;  %s2617_s30 = smov 128  }
  0x80   : > { %1377 = dma.hbm_to_vmem [thread:$0]  (!%p1908_p6), %s1918_s15, 512, %s1913_s27, %s1811_s4, %s2617_s30, %s2617_s30, %s2616_s10  }
  0x81   : > { %p2618_p9 = scmp.ne.s32.totalorder %s2605_s12, 0 }
  0x82   : > { %p2619_p11 = scmp.eq.s32.totalorder (!%p2618_p9), %s1822_s6, 0 }
  0x83   : > { %244 = sbr.rel (%p2618_p9) target bundleno = 2366 (0x93e), region = 32 }
  0x88   : > { %1628 = dma.done.wait (%p2619_p11), [#allocation9], 32   ;;  %p2620_p2 = pmov %p2619_p11 }
  0x89   : > { %s250_s17 = sand.u32 1, %s1822_s6   ;;  %s1950_s16 = sand.u32 1, %s1661_s22  }
  0x8a   : > { %1630 = vsyncadd (%p2620_p2), [#allocation9], 4294967264  ;;  %s1261_s7 = sshll.u32 %s1950_s16, 4  ;;  %s251_s13 = scalar_lea.sflag [#allocation12], %s250_s17 }
  0x8b   : > { %s254_s8 = scalar_lea.vmem [#allocation11], %s1261_s7  ;;  %p2621_p0 = scmp.ne.s32.totalorder %s2600_s26, 0 }
  0x8d   : > { %1632 = dma.done.wait (%p2621_p0), %s251_s13, 256  }
  0x8e   : > { %1634 = vsyncadd (%p2621_p0), %s251_s13, 4294967040  ;;  %s261_s4 = sand.u32 1, %s1649_s19   ;;  %p2622_p10 = scmp.ne.s32.totalorder %s2602_s9, 0 }
  0x8f   : > { %s1262_s15 = sshll.u32 %s261_s4, 5 }
  0x90   : > { %s1958_s12 = scalar_lea.vmem [#allocation13], %s1262_s15 }
  0x91   : > { %1636 = dma.done.wait (%p2622_p10), %s251_s13, 512  }
  0x92   : > { %1638 = vsyncadd (%p2622_p10), %s251_s13, 4294966784  ;;  %s1263_s6 = sshll.u32 %s1669_s0, 7  ;;  %v320_v0 = vlaneseq  ;;  %v1685_v1 = vmov 0.0   ;;  %v1686_v2 = vmov -inf   ;;  %v1982_v6 = vld [vmem:[%s254_s8] sm:$0xff]  ;;  %v1984_v7 = vld [vmem:[%s254_s8 + $0x8] sm:$0xff] }
  0x93   : > { %s1965_s27 = sld [smem:[#allocation7 + %s1263_s6]]  ;;  %s304_s14 = sadd.s32 1, %s1263_s6  ;;  %314 = vst [vmem:[#allocation2] sm:$0x1] %v1685_v1  ;;  %317 = vst [vmem:[#allocation5] sm:$0x1] %v1685_v1 }
  0x94   : > { %315 = vst [vmem:[#allocation3] sm:$0x1] %v1686_v2  ;;  %316 = vst [vmem:[#allocation4] sm:$0x1] %v1686_v2  ;;  %s1969_s26 = sld [smem:[#allocation7 + %s304_s14]]  ;;  %s306_s9 = sadd.s32 2, %s1263_s6 }
  0x95   : > { %v1971_v3 = vshrl.u32 %v320_v0, 7  ;;  %v1973_v4 = vand.u32 127, %v320_v0  ;;  %s1975_s5 = sld [smem:[#allocation7 + %s306_s9]]  ;;  %s308_s1 = sadd.s32 3, %s1263_s6  ;;  %v330_v8 = vand.u32 2147483647, %v1982_v6 }
  0x96   : > { %s1977_s2 = sld [smem:[#allocation7 + %s308_s1]]  ;;  %v331_v9 = vand.u32 2147483647, %v1984_v7  ;;  %v328_v26 = vmax.f32 %v1982_v6, 0.0  ;;  %v329_v29 = vmax.f32 %v1984_v7, 0.0  ;;  %s289_s10 = scalar_lea.vmem [#allocation14], %s1950_s16 }
  0x97   : > { %v1980_v5 = vadd.s32 8, %v1971_v3  ;;  %v332_v10 = vsub.f32 0.0, %v330_v8 }
  0x98   : > { %v333_v11 = vsub.f32 0.0, %v331_v9 }
  0x99   : > { %s1987_s23 = sadd.s32 1, %s1965_s27  ;;  %s1990_s28 = sadd.s32 4294967295, %s1965_s27  ;;  %v334_v12 = vmul.f32 1.442695, %v332_v10 }
  0x9a   : > { %p359_p6 = scmp.ge.s32.totalorder %s1987_s23, 0  ;;  %p362_p7 = scmp.lt.s32.totalorder %s1990_s28, 16  ;;  %v336_v13 = vmul.f32 1.442695, %v333_v11 }
  0x9b   : > { %1465 = vpow2.f32 %v334_v12 }
  0x9c   : > { %p2000_p3 = pnand %p362_p7, %p359_p6  ;;  %1467 = vpow2.f32 %v336_v13 }
  0xa8   : > { %v1466_v14 = vpop.eup %1465 }
  0xa9   : > { %v1468_v15 = vpop.eup %1467  ;;  %v338_v16 = vadd.f32 1.0, %v1466_v14  ;;  %v341_v18 = vmul.f32 -0.5, %v1466_v14  ;;  %v344_v21 = vand.u32 2147483647, %v1466_v14 }
  0xaa   : > { %v347_v17 = vadd.f32 1.0, %v1468_v15  ;;  %v350_v19 = vmul.f32 -0.5, %v1468_v15  ;;  %v353_v23 = vand.u32 2147483647, %v1468_v15 }
  0xab   : > { %1469 = vlog2.f32 %v338_v16  ;;  %v342_v20 = vadd.f32 1.0, %v341_v18  ;;  %vm345_vm0 = vcmp.lt.f32.partialorder %v344_v21, 0.0004427343 }
  0xac   : > { %1471 = vlog2.f32 %v347_v17  ;;  %v351_v22 = vadd.f32 1.0, %v350_v19  ;;  %vm354_vm1 = vcmp.lt.f32.partialorder %v353_v23, 0.0004427343 }
  0xad   : > { %v343_v24 = vmul.f32 %v1466_v14, %v342_v20 }
  0xae   : > { %v352_v27 = vmul.f32 %v1468_v15, %v351_v22 }
  0xb8   : > { %v1470_v25 = vpop.eup %1469 }
  0xb9   : > { %v1472_v28 = vpop.eup %1471  ;;  %v340_v30 = vmul.f32 0.6931472, %v1470_v25  ;;  %366 = sbr.rel (%p2000_p3) target bundleno = 416 (0x1a0), region = 52 }
  0xba   : > { %v349_v31 = vmul.f32 0.6931472, %v1472_v28 }
  0xbb   : > { %v346_v32 = vsel %vm345_vm0, %v343_v24, %v340_v30 }
  0xbc   : > { %v355_v33 = vsel %vm354_vm1, %v352_v27, %v349_v31  ;;  %v2006_v34 = vadd.f32 %v346_v32, %v328_v26 }
  0xbd   : > { %v2008_v35 = vadd.f32 %v355_v33, %v329_v29 }
  0xbe   : > { %v367_v36 = vstv %s1965_s27  ;;  %v370_v37 = vstv %s1969_s26  ;;  %v1687_v41 = vmov 0.0   ;;  %vm411_vm13 = vcmask 130048   ;;  %v408_v21 = vld [vmem:[#allocation2] sm:$0x1] }
  0xbf   : > { %v368_v38 = vsub.s32 %v1971_v3, %v367_v36  ;;  %v369_v39 = vsub.s32 %v1980_v5, %v367_v36  ;;  %v371_v40 = vsub.s32 %v1973_v4, %v370_v37 }
  0xc1   : > { %vm372_vm2 = vcmp.eq.s32.totalorder %v368_v38, 4294967295  ;;  %vm373_vm3 = vcmp.eq.s32.totalorder %v369_v39, 4294967295  ;;  %vm376_vm4 = vcmp.eq.s32.totalorder %v371_v40, 4294967295  ;;  %vm378_vm5 = vcmp.eq.s32.totalorder %v368_v38, 0 }
  0xc2   : > { %v374_v42 = vsel %vm372_vm2, 0.25, %v1687_v41  ;;  %v375_v43 = vsel %vm373_vm3, 0.25, %v1687_v41  ;;  %v377_v44 = vsel %vm376_vm4, 0.25, %v1687_v41  ;;  %vm379_vm6 = vcmp.eq.s32.totalorder %v369_v39, 0 }
  0xc3   : > { %v380_v45 = vsel %vm378_vm5, 0.5, %v1687_v41  ;;  %v381_v46 = vsel %vm379_vm6, 0.5, %v1687_v41  ;;  %vm384_vm7 = vcmp.eq.s32.totalorder %v371_v40, 0  ;;  %vm387_vm8 = vcmp.eq.s32.totalorder %v368_v38, 1 }
  0xc4   : > { %v382_v47 = vadd.f32 %v380_v45, %v374_v42  ;;  %v383_v48 = vadd.f32 %v381_v46, %v375_v43  ;;  %v385_v49 = vsel %vm384_vm7, 0.5, %v1687_v41  ;;  %vm388_vm9 = vcmp.eq.s32.totalorder %v369_v39, 1 }
  0xc5   : > { %v386_v50 = vadd.f32 %v385_v49, %v377_v44  ;;  %v389_v51 = vsel %vm387_vm8, 0.25, %v1687_v41  ;;  %v390_v52 = vsel %vm388_vm9, 0.25, %v1687_v41  ;;  %vm393_vm10 = vcmp.eq.s32.totalorder %v371_v40, 1 }
  0xc6   : > { %v391_v53 = vadd.f32 %v389_v51, %v382_v47  ;;  %v392_v54 = vadd.f32 %v390_v52, %v383_v48  ;;  %v394_v55 = vsel %vm393_vm10, 0.25, %v1687_v41 }
  0xc7   : > { %v395_v56 = vadd.f32 %v394_v55, %v386_v50 }
  0xc9   : > { %v396_v57 = vmul.f32 %v395_v56, %v391_v53  ;;  %v397_v58 = vmul.f32 %v395_v56, %v392_v54 }
  0xcb   : > { %vm398_vm11 = vcmp.gt.f32.partialorder %v396_v57, 0.0  ;;  %vm399_vm12 = vcmp.gt.f32.partialorder %v397_v58, 0.0  ;;  %v400_v59 = vmul.f32 0.5, %v396_v57  ;;  %v401_v60 = vmul.f32 0.5, %v397_v58 }
  0xcc   : > { %v404_v61 = vsel %vm398_vm11, %v1982_v6, 0.0  ;;  %v405_v62 = vsel %vm399_vm12, %v1984_v7, 0.0 }
  0xcd   : > { %v402_v63 = vsel %vm398_vm11, %v400_v59, 0.030364372  ;;  %v403_v0 = vsel %vm399_vm12, %v401_v60, 0.030364372  ;;  %v406_v2 = vsub.f32 %v2006_v34, %v404_v61  ;;  %v407_v8 = vsub.f32 %v2008_v35, %v405_v62 }
  0xcf   : > { %v409_v9 = vmul.f32 %v406_v2, %v402_v63  ;;  %v410_v10 = vmul.f32 %v407_v8, %v403_v0 }
  0xd1   : > { %v412_v11 = vsel %vm411_vm13, %v409_v9, 0.0  ;;  %v413_v12 = vsel %vm411_vm13, %v410_v10, 0.0 }
  0xd2   : > { %v414_v13 = vadd.f32 %v413_v12, %v412_v11 }
  0xd4   : > { %415 = vadd.xlane.f32.xlu0 %v414_v13 }
 0x15d   : > { %v416_v14 = vpop.xlane.xlu0 %415 }
 0x15e   : > { %v417_v15 = vrot.slane %v416_v14, 4 }
 0x160   : > { %v418_v16 = vadd.f32 %v417_v15, %v416_v14 }
 0x162   : > { %v419_v17 = vrot.slane %v418_v16, 2 }
 0x164   : > { %v420_v18 = vadd.f32 %v419_v17, %v418_v16 }
 0x166   : > { %v421_v19 = vrot.slane %v420_v18, 1 }
 0x168   : > { %v422_v20 = vadd.f32 %v421_v19, %v420_v18 }
 0x16a   : > { %1281 = vpush %v422_v20 }
 0x19b   : > { %s1282_s30 = spop %1281 }
 0x19c   : > { %v424_v22 = vstv %s1282_s30 }
 0x19d   : > { %v425_v23 = vadd.f32 %v424_v22, %v408_v21 }
 0x19f   : > { %426 = vst [vmem:[#allocation2] sm:$0x1] %v425_v23 }
 0x1a0 PF: > { %429 = sbr.rel (!%p2000_p3) target bundleno = 626 (0x272), region = 56  ;;  %vm430_vm14 = vcmask (%p2000_p3), 130048  }
 0x1a1   : > { %v431_v24 = vsel (%p2000_p3), %vm430_vm14, %v2006_v34, 0.0  ;;  %v432_v25 = vsel (%p2000_p3), %vm430_vm14, %v2008_v35, 0.0 }
 0x1a2   : > { %v433_v26 = vadd.f32 (%p2000_p3), %v432_v25, %v431_v24 }
 0x1a4   : > { %434 = vadd.xlane.f32.xlu0 (%p2000_p3), %v433_v26 }
 0x1a6   : > { %v443_v36 = vld [vmem:[#allocation2] sm:$0x1] }
 0x22d   : > { %v435_v27 = vpop.xlane.xlu0 %434 }
 0x22e   : > { %v436_v28 = vrot.slane %v435_v27, 4 }
 0x230   : > { %v437_v29 = vadd.f32 %v436_v28, %v435_v27 }
 0x232   : > { %v438_v30 = vrot.slane %v437_v29, 2 }
 0x234   : > { %v439_v31 = vadd.f32 %v438_v30, %v437_v29 }
 0x236   : > { %v440_v32 = vrot.slane %v439_v31, 1 }
 0x238   : > { %v441_v33 = vadd.f32 %v440_v32, %v439_v31 }
 0x23a   : > { %1283 = vpush %v441_v33 }
 0x26b   : > { %s1284_s17 = spop %1283 }
 0x26c   : > { %s444_s7 = smul.f32 0.030364372, %s1284_s17 }
 0x26e   : > { %v445_v37 = vstv %s444_s7 }
 0x26f   : > { %v446_v38 = vadd.f32 %v445_v37, %v443_v36 }
 0x271   : > { %447 = vst [vmem:[#allocation2] sm:$0x1] %v446_v38 }
 0x272 PF: > { %vm449_vm15 = vcmask 130048   ;;  %v448_v40 = vld [vmem:[#allocation3] sm:$0x1]  ;;  %vm2569_vm0 = vcmask 1040384   ;;  %vm2573_vm4 = vcmp.eq.s32.totalorder %v1973_v4, 0  ;;  %vm2572_vm5 = vcmp.eq.s32.totalorder %v1973_v4, 1 }
 0x273   : > { %v450_v34 = vsel %vm449_vm15, %v1982_v6, -inf  ;;  %v451_v35 = vsel %vm449_vm15, %v1984_v7, -inf  ;;  %v463_v41 = vsel %vm2569_vm0, %v448_v40, -inf  ;;  %vm2571_vm9 = vcmp.eq.s32.totalorder %v1973_v4, 2  ;;  %p1265_p1 = scmp.le.s32.totalorder %s1975_s5, 0  ;;  %p1266_p12 = scmp.ge.s32.totalorder %s1977_s2, 0 }
 0x274   : > { %v452_v39 = vmax.f32 %v450_v34, %v451_v35  ;;  %vm2570_vm13 = vcmp.eq.s32.totalorder %v1973_v4, 3 }
 0x275   : > { %p2055_p5 = pnand %p1266_p12, %p1265_p1 }
 0x276   : > { %453 = vmax.xlane.f32.xlu0 %v452_v39  ;;  %p657_p8 = scmp.ge.s32.totalorder (!%p2055_p5), %s1990_s28, 0  ;;  %p795_p4 = scmp.ge.s32.totalorder (!%p2055_p5), %s1965_s27, 0 }
 0x277   : > { %p796_p9 = scmp.lt.s32.totalorder (!%p2055_p5), %s1965_s27, 16  ;;  %p922_p2 = scmp.lt.s32.totalorder (!%p2055_p5), %s1987_s23, 16 }
 0x278   : > { %p659_p13 = pnand (!%p2055_p5), %p657_p8, %p362_p7 }
 0x279   : > { %p797_p11 = pnand (!%p2055_p5), %p796_p9, %p795_p4  ;;  %p2168_p0 = pnand (!%p2055_p5), %p922_p2, %p359_p6 }
 0x27a   : > { %464 = vmax.xlane.f32.xlu0 %v463_v41 }
 0x2ff   : > { %v454_v42 = vpop.xlane.xlu0 %453 }
 0x300   : > { %v455_v43 = vrot.slane %v454_v42, 4 }
 0x302   : > { %v456_v44 = vmax.f32 %v454_v42, %v455_v43 }
 0x303   : > { %v465_v45 = vpop.xlane.xlu0 %464 }
 0x304   : > { %v457_v46 = vrot.slane %v456_v44, 2  ;;  %v466_v47 = vrot.slane %v465_v45, 4 }
 0x306   : > { %v467_v48 = vmax.f32 %v465_v45, %v466_v47  ;;  %v458_v49 = vmax.f32 %v456_v44, %v457_v46 }
 0x308   : > { %v468_v50 = vrot.slane %v467_v48, 2  ;;  %v459_v51 = vrot.slane %v458_v49, 1 }
 0x30a   : > { %v460_v52 = vmax.f32 %v458_v49, %v459_v51  ;;  %v469_v53 = vmax.f32 %v467_v48, %v468_v50 }
 0x30c   : > { %1285 = vpush %v460_v52  ;;  %v470_v54 = vrot.slane %v469_v53, 1 }
 0x30e   : > { %v471_v55 = vmax.f32 %v469_v53, %v470_v54 }
 0x310   : > { %1287 = vpush %v471_v55 }
 0x33d   : > { %s1286_s13 = spop %1285 }
 0x341   : > { %s1288_s8 = spop %1287 }
 0x342   : > { %s473_s4 = smax.f32 %s1288_s8, %s1286_s13  ;;  %s669_s13 = sadd.s32 (!%p2055_p5), 4294967295, %s1969_s26 }
 0x343   : > { %v474_v56 = vstv %s473_s4  ;;  %s754_s8 = sadd.s32 (!%p2055_p5), 1, %s1969_s26 }
 0x344   : > { %vm475_vm1 = vcmp.eq.f32.partialorder %v1982_v6, %v474_v56  ;;  %vm476_vm2 = vcmp.eq.f32.partialorder %v1984_v7, %v474_v56  ;;  %vm479_vm3 = vcmp.eq.f32.partialorder %v448_v40, %v474_v56  ;;  %v482_v20 = vsel %vm2573_vm4, %v474_v56, -inf }
 0x345   : > { %v477_v57 = vsel %vm475_vm1, -inf, %v1982_v6  ;;  %v478_v58 = vsel %vm476_vm2, -inf, %v1984_v7  ;;  %v480_v62 = vsel %vm479_vm3, -inf, %v448_v40 }
 0x346   : > { %v483_v59 = vsel %vm449_vm15, %v477_v57, -inf  ;;  %v484_v60 = vsel %vm449_vm15, %v478_v58, -inf  ;;  %v495_v63 = vsel %vm2569_vm0, %v480_v62, -inf }
 0x347   : > { %v485_v61 = vmax.f32 %v483_v59, %v484_v60 }
 0x349   : > { %486 = vmax.xlane.f32.xlu1 %v485_v61 }
 0x34d   : > { %496 = vmax.xlane.f32.xlu1 %v495_v63 }
 0x3d2   : > { %v487_v0 = vpop.xlane.xlu1 %486 }
 0x3d3   : > { %v488_v2 = vrot.slane %v487_v0, 4 }
 0x3d5   : > { %v489_v8 = vmax.f32 %v487_v0, %v488_v2 }
 0x3d6   : > { %v497_v9 = vpop.xlane.xlu1 %496 }
 0x3d7   : > { %v490_v10 = vrot.slane %v489_v8, 2  ;;  %v498_v11 = vrot.slane %v497_v9, 4 }
 0x3d9   : > { %v499_v12 = vmax.f32 %v497_v9, %v498_v11  ;;  %v491_v13 = vmax.f32 %v489_v8, %v490_v10 }
 0x3db   : > { %v500_v14 = vrot.slane %v499_v12, 2  ;;  %v492_v15 = vrot.slane %v491_v13, 1 }
 0x3dd   : > { %v493_v16 = vmax.f32 %v491_v13, %v492_v15  ;;  %v501_v17 = vmax.f32 %v499_v12, %v500_v14 }
 0x3df   : > { %1289 = vpush %v493_v16  ;;  %v502_v18 = vrot.slane %v501_v17, 1 }
 0x3e1   : > { %v503_v19 = vmax.f32 %v501_v17, %v502_v18 }
 0x3e3   : > { %1291 = vpush %v503_v19 }
 0x410   : > { %s1290_s15 = spop %1289 }
 0x414   : > { %s1292_s6 = spop %1291 }
 0x415   : > { %s505_s14 = smax.f32 %s1292_s6, %s1290_s15 }
 0x416   : > { %v506_v21 = vstv %s505_s14 }
 0x417   : > { %vm507_vm6 = vcmp.eq.f32.partialorder %v477_v57, %v506_v21  ;;  %vm508_vm7 = vcmp.eq.f32.partialorder %v478_v58, %v506_v21  ;;  %v514_v22 = vsel %vm2572_vm5, %v506_v21, %v482_v20  ;;  %vm511_vm8 = vcmp.eq.f32.partialorder %v480_v62, %v506_v21 }
 0x418   : > { %v512_v23 = vsel %vm511_vm8, -inf, %v480_v62  ;;  %v509_v24 = vsel %vm507_vm6, -inf, %v477_v57  ;;  %v510_v25 = vsel %vm508_vm7, -inf, %v478_v58 }
 0x419   : > { %v527_v26 = vsel %vm2569_vm0, %v512_v23, -inf  ;;  %v515_v27 = vsel %vm449_vm15, %v509_v24, -inf  ;;  %v516_v28 = vsel %vm449_vm15, %v510_v25, -inf }
 0x41a   : > { %528 = vmax.xlane.f32.xlu1 %v527_v26  ;;  %v517_v29 = vmax.f32 %v515_v27, %v516_v28 }
 0x41c   : > { %518 = vmax.xlane.f32.xlu0 %v517_v29 }
 0x4a3   : > { %v529_v30 = vpop.xlane.xlu1 %528 }
 0x4a4   : > { %v530_v31 = vrot.slane %v529_v30, 4 }
 0x4a5   : > { %v519_v32 = vpop.xlane.xlu0 %518 }
 0x4a6   : > { %v531_v33 = vmax.f32 %v529_v30, %v530_v31  ;;  %v520_v36 = vrot.slane %v519_v32, 4 }
 0x4a8   : > { %v532_v37 = vrot.slane %v531_v33, 2  ;;  %v521_v38 = vmax.f32 %v519_v32, %v520_v36 }
 0x4aa   : > { %v522_v34 = vrot.slane %v521_v38, 2  ;;  %v533_v35 = vmax.f32 %v531_v33, %v532_v37 }
 0x4ac   : > { %v523_v39 = vmax.f32 %v521_v38, %v522_v34  ;;  %v534_v40 = vrot.slane %v533_v35, 1 }
 0x4ae   : > { %v524_v41 = vrot.slane %v523_v39, 1  ;;  %v535_v43 = vmax.f32 %v533_v35, %v534_v40 }
 0x4b0   : > { %v525_v42 = vmax.f32 %v523_v39, %v524_v41 }
 0x4b2   : > { %1293 = vpush %v525_v42 }
 0x4b3   : > { %1295 = vpush %v535_v43 }
 0x4e3   : > { %s1294_s9 = spop %1293 }
 0x4e4   : > { %s1296_s1 = spop %1295 }
 0x4e5   : > { %s537_s29 = smax.f32 %s1296_s1, %s1294_s9 }
 0x4e6   : > { %v538_v44 = vstv %s537_s29 }
 0x4e7   : > { %v546_v45 = vsel %vm2571_vm9, %v538_v44, %v514_v22  ;;  %vm543_vm10 = vcmp.eq.f32.partialorder %v512_v23, %v538_v44  ;;  %vm539_vm11 = vcmp.eq.f32.partialorder %v509_v24, %v538_v44  ;;  %vm540_vm12 = vcmp.eq.f32.partialorder %v510_v25, %v538_v44 }
 0x4e8   : > { %v544_v46 = vsel %vm543_vm10, -inf, %v512_v23  ;;  %v541_v47 = vsel %vm539_vm11, -inf, %v509_v24  ;;  %v542_v48 = vsel %vm540_vm12, -inf, %v510_v25 }
 0x4e9   : > { %v559_v49 = vsel %vm2569_vm0, %v544_v46, -inf  ;;  %v547_v50 = vsel %vm449_vm15, %v541_v47, -inf  ;;  %v548_v51 = vsel %vm449_vm15, %v542_v48, -inf }
 0x4ea   : > { %560 = vmax.xlane.f32.xlu1 %v559_v49  ;;  %v549_v52 = vmax.f32 %v547_v50, %v548_v51 }
 0x4ec   : > { %550 = vmax.xlane.f32.xlu0 %v549_v52 }
 0x573   : > { %v561_v53 = vpop.xlane.xlu1 %560 }
 0x574   : > { %v562_v54 = vrot.slane %v561_v53, 4 }
 0x575   : > { %v551_v55 = vpop.xlane.xlu0 %550 }
 0x576   : > { %v563_v56 = vmax.f32 %v561_v53, %v562_v54  ;;  %v552_v57 = vrot.slane %v551_v55, 4 }
 0x578   : > { %v564_v58 = vrot.slane %v563_v56, 2  ;;  %v553_v59 = vmax.f32 %v551_v55, %v552_v57 }
 0x57a   : > { %v565_v60 = vmax.f32 %v563_v56, %v564_v58  ;;  %v554_v61 = vrot.slane %v553_v59, 2 }
 0x57c   : > { %v555_v62 = vmax.f32 %v553_v59, %v554_v61  ;;  %v566_v63 = vrot.slane %v565_v60, 1 }
 0x57e   : > { %v556_v0 = vrot.slane %v555_v62, 1  ;;  %v567_v8 = vmax.f32 %v565_v60, %v566_v63 }
 0x580   : > { %v557_v2 = vmax.f32 %v555_v62, %v556_v0 }
 0x582   : > { %1297 = vpush %v557_v2 }
 0x583   : > { %1299 = vpush %v567_v8 }
 0x5b3   : > { %s1298_s5 = spop %1297 }
 0x5b4   : > { %s1300_s2 = spop %1299  ;;  %579 = sbr.rel (%p2055_p5) target bundleno = 1929 (0x789), region = 60 }
 0x5b5   : > { %s569_s17 = smax.f32 %s1300_s2, %s1298_s5 }
 0x5b6   : > { %v571_v9 = vstv %s569_s17 }
 0x5b7   : > { %v572_v10 = vsel %vm2570_vm13, %v571_v9, %v546_v45 }
 0x5b8   : > { %573 = vst [vmem:[#allocation3] sm:$0x1] %v572_v10 }
 0x5b9   : > { %v580_v11 = vld [vmem:[#allocation8] sm:$0x3]  ;;  %v581_v12 = vstv %s1669_s0  ;;  %vm585_vm1 = vcmask 9216   ;;  %s1273_s7 = scalar_select %p659_p13, 0, 1  ;;  %v661_v17 = vstv %s1990_s28  ;;  %v670_v19 = vstv %s669_s13 }
 0x5ba   : > { %vm582_vm14 = vcmp.eq.s32.totalorder %v1971_v3, %v581_v12  ;;  %vm662_vm6 = vcmp.eq.s32.totalorder %v1971_v3, %v661_v17  ;;  %vm663_vm7 = vcmp.eq.s32.totalorder %v1980_v5, %v661_v17  ;;  %vm2082_vm11 = vcmp.eq.s32.totalorder %v1973_v4, %v670_v19  ;;  %s1274_s28 = scalar_select %p797_p11, 0, 1 }
 0x5bb   : > { %vm583_vm2 = vmand %vm582_vm14, %vm2573_vm4  ;;  %v665_v18 = vstv %s1273_s7  ;;  %v714_v28 = vstv %s1969_s26  ;;  %v799_v30 = vstv %s1965_s27  ;;  %v755_v32 = vstv %s754_s8  ;;  %s1275_s26 = scalar_select %p2168_p0, 0, 1 }
 0x5bc   : > { %v584_v13 = vsel %vm583_vm2, %v580_v11, 0.0  ;;  %vm596_vm3 = vmand %vm582_vm14, %vm2572_vm5  ;;  %vm666_vm8 = vcmp.eq.s32.totalorder %v665_v18, 1  ;;  %vm2116_vm2 = vcmp.eq.s32.totalorder %v1973_v4, %v714_v28  ;;  %v803_v31 = vstv %s1274_s28 }
 0x5bd   : > { %v586_v14 = vsel %vm585_vm1, %v584_v13, 0.0  ;;  %v597_v15 = vsel %vm596_vm3, %v580_v11, 0.0  ;;  %vm2077_vm10 = vmand %vm662_vm6, %vm666_vm8  ;;  %vm804_vm0 = vcmp.eq.s32.totalorder %v803_v31, 1  ;;  %vm801_vm9 = vcmp.eq.s32.totalorder %v1980_v5, %v799_v30 }
 0x5be   : > { %587 = vadd.xlane.f32.xlu0 %v586_v14  ;;  %v598_v16 = vsel %vm585_vm1, %v597_v15, 0.0  ;;  %vm2086_vm12 = vmand %vm663_vm7, %vm666_vm8  ;;  %vm2138_vm7 = vcmp.eq.s32.totalorder %v1973_v4, %v755_v32  ;;  %vm800_vm8 = vcmp.eq.s32.totalorder %v1971_v3, %v799_v30  ;;  %v925_v51 = vstv %s1987_s23 }
 0x5bf   : > { %vm678_vm14 = vmand %vm2077_vm10, %vm2082_vm11  ;;  %v929_v52 = vstv %s1275_s26 }
 0x5c0   : > { %vm2582_vm1 = vmand %vm2086_vm12, %vm2082_vm11  ;;  %v680_v23 = vsel %vm678_vm14, %v1982_v6, -inf }
 0x5c1   : > { %v681_v24 = vsel %vm2582_vm1, %v1984_v7, -inf  ;;  %v682_v25 = vsel %vm449_vm15, %v680_v23, -inf  ;;  %vm2581_vm3 = vmand %vm2077_vm10, %vm2116_vm2 }
 0x5c2   : > { %599 = vadd.xlane.f32.xlu0 %v598_v16  ;;  %v683_v26 = vsel %vm449_vm15, %v681_v24, -inf  ;;  %vm2578_vm6 = vmand %vm2086_vm12, %vm2116_vm2  ;;  %v720_v33 = vsel %vm2581_vm3, %v1982_v6, -inf }
 0x5c3   : > { %v684_v27 = vmax.f32 %v682_v25, %v683_v26  ;;  %v721_v37 = vsel %vm2578_vm6, %v1984_v7, -inf  ;;  %v722_v38 = vsel %vm449_vm15, %v720_v33, -inf  ;;  %vm2574_vm13 = vmand %vm2077_vm10, %vm2138_vm7 }
 0x5c4   : > { %v723_v34 = vsel %vm449_vm15, %v721_v37, -inf  ;;  %vm2575_vm5 = vmand %vm2086_vm12, %vm2138_vm7  ;;  %v761_v40 = vsel %vm2574_vm13, %v1982_v6, -inf }
 0x5c5   : > { %685 = vmax.xlane.f32.xlu1 %v684_v27  ;;  %v724_v35 = vmax.f32 %v722_v38, %v723_v34  ;;  %vm2160_vm4 = vmand %vm800_vm8, %vm804_vm0  ;;  %v762_v41 = vsel %vm2575_vm5, %v1984_v7, -inf  ;;  %v763_v43 = vsel %vm449_vm15, %v761_v40, -inf  ;;  %v613_v40 = vcvt.s32.f32 %v1971_v3 }
 0x5c6   : > { %vm2184_vm8 = vmand %vm801_vm9, %vm804_vm0  ;;  %v764_v44 = vsel %vm449_vm15, %v762_v41, -inf  ;;  %v614_v41 = vcvt.s32.f32 %v1980_v5 }
 0x5c7   : > { %725 = vmax.xlane.f32.xlu0 %v724_v35  ;;  %v765_v45 = vmax.f32 %v763_v43, %v764_v44  ;;  %vm2577_vm13 = vmand %vm2160_vm4, %vm2082_vm11  ;;  %v616_v43 = vmul.f32 0.06666667, %v613_v40 }
 0x5c8   : > { %vm2576_vm5 = vmand %vm2184_vm8, %vm2082_vm11  ;;  %v813_v46 = vsel %vm2577_vm13, %v1982_v6, -inf  ;;  %vm930_vm13 = vcmp.eq.s32.totalorder %v929_v52, 1  ;;  %v617_v44 = vmul.f32 0.06666667, %v614_v41 }
 0x5c9   : > { %v814_v47 = vsel %vm2576_vm5, %v1984_v7, -inf  ;;  %v815_v48 = vsel %vm449_vm15, %v813_v46, -inf  ;;  %vm2579_vm0 = vmand %vm2160_vm4, %vm2116_vm2  ;;  %vm926_vm5 = vcmp.eq.s32.totalorder %v1971_v3, %v925_v51  ;;  %v608_v46 = vld [vmem:[%s1958_s12] sm:$0xff] }
 0x5ca   : > { %v816_v49 = vsel %vm449_vm15, %v814_v47, -inf  ;;  %vm2580_vm9 = vmand %vm2184_vm8, %vm2116_vm2  ;;  %v849_v53 = vsel %vm2579_vm0, %v1982_v6, -inf  ;;  %vm927_vm0 = vcmp.eq.s32.totalorder %v1980_v5, %v925_v51  ;;  %v609_v47 = vld [vmem:[%s1958_s12 + $0x8] sm:$0xff]  ;;  %v1267_v5 = vld [vmem:[%s1958_s12 + $0x10] sm:$0xff] }
 0x5cb   : > { %766 = vmax.xlane.f32.xlu0 %v765_v45  ;;  %v817_v50 = vmax.f32 %v815_v48, %v816_v49  ;;  %v850_v54 = vsel %vm2580_vm9, %v1984_v7, -inf  ;;  %v851_v55 = vsel %vm449_vm15, %v849_v53, -inf  ;;  %vm2583_vm6 = vmand %vm2160_vm4, %vm2138_vm7  ;;  %v615_v45 = vcvt.s32.f32 %v1973_v4 }
 0x5cc   : > { %v852_v56 = vsel %vm449_vm15, %v850_v54, -inf  ;;  %vm2590_vm9 = vmand %vm2184_vm8, %vm2138_vm7  ;;  %v886_v59 = vsel %vm2583_vm6, %v1982_v6, -inf }
 0x5cd   : > { %v853_v57 = vmax.f32 %v851_v55, %v852_v56  ;;  %vm2247_vm3 = vmand %vm926_vm5, %vm930_vm13  ;;  %v887_v60 = vsel %vm2590_vm9, %v1984_v7, -inf  ;;  %v888_v62 = vsel %vm449_vm15, %v886_v59, -inf  ;;  %v621_v51 = vmul.f32 0.06666667, %v615_v45  ;;  %v1268_v56 = vld [vmem:[%s1958_s12 + $0x18] sm:$0xff] }
 0x5ce   : > { %vm2263_vm1 = vmand %vm927_vm0, %vm930_vm13  ;;  %v889_v63 = vsel %vm449_vm15, %v887_v60, -inf }
 0x5cf   : > { %818 = vmax.xlane.f32.xlu0 %v817_v50  ;;  %v890_v0 = vmax.f32 %v888_v62, %v889_v63  ;;  %vm2589_vm5 = vmand %vm2247_vm3, %vm2082_vm11 }
 0x5d0   : > { %vm2584_vm6 = vmand %vm2263_vm1, %vm2082_vm11  ;;  %v939_v2 = vsel %vm2589_vm5, %v1982_v6, -inf }
 0x5d1   : > { %v940_v8 = vsel %vm2584_vm6, %v1984_v7, -inf  ;;  %v941_v9 = vsel %vm449_vm15, %v939_v2, -inf  ;;  %vm2585_vm13 = vmand %vm2247_vm3, %vm2116_vm2 }
 0x5d2   : > { %v942_v10 = vsel %vm449_vm15, %v940_v8, -inf  ;;  %vm2588_vm0 = vmand %vm2263_vm1, %vm2116_vm2  ;;  %v976_v12 = vsel %vm2585_vm13, %v1982_v6, -inf }
 0x5d3   : > { %854 = vmax.xlane.f32.xlu0 %v853_v57  ;;  %v943_v11 = vmax.f32 %v941_v9, %v942_v10  ;;  %v977_v13 = vsel %vm2588_vm0, %v1984_v7, -inf  ;;  %v978_v14 = vsel %vm449_vm15, %v976_v12, -inf  ;;  %vm2587_vm6 = vmand %vm2247_vm3, %vm2138_vm7 }
 0x5d4   : > { %v979_v15 = vsel %vm449_vm15, %v977_v13, -inf  ;;  %vm2586_vm13 = vmand %vm2263_vm1, %vm2138_vm7  ;;  %v1013_v17 = vsel %vm2587_vm6, %v1982_v6, -inf }
 0x5d5   : > { %v980_v16 = vmax.f32 %v978_v14, %v979_v15  ;;  %v1014_v18 = vsel %vm2586_vm13, %v1984_v7, -inf  ;;  %v1015_v19 = vsel %vm449_vm15, %v1013_v17, -inf  ;;  %vm2648_vm9 = vmand %vm2086_vm12, %vm2082_vm11 }
 0x5d6   : > { %v1016_v23 = vsel %vm449_vm15, %v1014_v18, -inf }
 0x5d7   : > { %891 = vmax.xlane.f32.xlu0 %v890_v0  ;;  %v1017_v24 = vmax.f32 %v1015_v19, %v1016_v23 }
 0x5db   : > { %944 = vmax.xlane.f32.xlu0 %v943_v11 }
 0x5df   : > { %981 = vmax.xlane.f32.xlu0 %v980_v16 }
 0x5e3   : > { %1018 = vmax.xlane.f32.xlu0 %v1017_v24 }
 0x647   : > { %v588_v25 = vpop.xlane.xlu0 %587 }
 0x648   : > { %v589_v26 = vrot.slane %v588_v25, 4 }
 0x64a   : > { %v590_v27 = vadd.f32 %v589_v26, %v588_v25 }
 0x64b   : > { %v600_v28 = vpop.xlane.xlu0 %599 }
 0x64c   : > { %v591_v30 = vrot.slane %v590_v27, 2  ;;  %v601_v31 = vrot.slane %v600_v28, 4 }
 0x64e   : > { %v602_v6 = vadd.f32 %v601_v31, %v600_v28  ;;  %v592_v32 = vadd.f32 %v591_v30, %v590_v27  ;;  %v686_v45 = vpop.xlane.xlu1 %685 }
 0x650   : > { %v603_v33 = vrot.slane %v602_v6, 2  ;;  %v593_v37 = vrot.slane %v592_v32, 1 }
 0x652   : > { %v594_v38 = vadd.f32 %v593_v37, %v592_v32  ;;  %v604_v7 = vadd.f32 %v603_v33, %v602_v6 }
 0x654   : > { %1301 = vpush %v594_v38  ;;  %v605_v34 = vrot.slane %v604_v7, 1 }
 0x656   : > { %v606_v35 = vadd.f32 %v605_v34, %v604_v7 }
 0x658   : > { %1303 = vpush %v606_v35 }
 0x685   : > { %s1302_s23 = spop %1301 }
 0x686   : > { %v618_v48 = vstv %s1302_s23 }
 0x687   : > { %v619_v49 = vsub.f32 %v618_v48, %v616_v43  ;;  %v620_v50 = vsub.f32 %v618_v48, %v617_v44 }
 0x689   : > { %v624_v52 = vsub.f32 %v608_v46, %v619_v49  ;;  %v625_v53 = vsub.f32 %v609_v47, %v620_v50  ;;  %s1304_s4 = spop %1303  ;;  %v687_v47 = vrot.slane %v686_v45, 4 }
 0x68a   : > { %v622_v54 = vstv %s1304_s4 }
 0x68b   : > { %v628_v3 = vand.u32 2147483647, %v624_v52  ;;  %v629_v55 = vand.u32 2147483647, %v625_v53  ;;  %v632_v57 = vmul.f32 0.5, %v624_v52  ;;  %v633_v59 = vmul.f32 0.5, %v625_v53 }
 0x68c   : > { %v623_v60 = vsub.f32 %v622_v54, %v621_v51 }
 0x68d   : > { %vm2342_vm13 = vcmp.lt.f32.partialorder %v628_v3, 1.0  ;;  %vm2346_vm6 = vcmp.lt.f32.partialorder %v629_v55, 1.0  ;;  %v634_v8 = vmul.f32 %v632_v57, %v624_v52  ;;  %v635_v9 = vmul.f32 %v633_v59, %v625_v53 }
 0x68e   : > { %v626_v62 = vsub.f32 %v1267_v5, %v623_v60  ;;  %v627_v63 = vsub.f32 %v1268_v56, %v623_v60  ;;  %v1269_v12 = vadd.f32 -0.5, %v628_v3  ;;  %v1270_v13 = vadd.f32 -0.5, %v629_v55 }
 0x68f   : > { %v688_v52 = vmax.f32 %v686_v45, %v687_v47 }
 0x690   : > { %v640_v10 = vand.u32 2147483647, %v626_v62  ;;  %v641_v11 = vand.u32 2147483647, %v627_v63  ;;  %v644_v14 = vmul.f32 0.5, %v626_v62  ;;  %v645_v15 = vmul.f32 0.5, %v627_v63 }
 0x691   : > { %v638_v23 = vsel %vm2342_vm13, %v634_v8, %v1269_v12  ;;  %v639_v24 = vsel %vm2346_vm6, %v635_v9, %v1270_v13  ;;  %vm2649_vm6 = vmand %vm2077_vm10, %vm2116_vm2  ;;  %v689_v54 = vrot.slane %v688_v52, 2 }
 0x692   : > { %vm642_vm0 = vcmp.lt.f32.partialorder %v640_v10, 1.0  ;;  %vm643_vm5 = vcmp.lt.f32.partialorder %v641_v11, 1.0  ;;  %v1271_v16 = vadd.f32 -0.5, %v640_v10  ;;  %v1272_v17 = vadd.f32 -0.5, %v641_v11  ;;  %vm2653_vm13 = vmand %vm2160_vm4, %vm2082_vm11 }
 0x693   : > { %v646_v18 = vmul.f32 %v644_v14, %v626_v62  ;;  %v647_v19 = vmul.f32 %v645_v15, %v627_v63  ;;  %v690_v59 = vmax.f32 %v688_v52, %v689_v54 }
 0x695   : > { %v650_v25 = vsel %vm642_vm0, %v646_v18, %v1271_v16  ;;  %v651_v26 = vsel %vm643_vm5, %v647_v19, %v1272_v17  ;;  %vm2650_vm5 = vmand %vm2086_vm12, %vm2116_vm2  ;;  %v691_v63 = vrot.slane %v690_v59, 1  ;;  %v726_v19 = vpop.xlane.xlu0 %725 }
 0x696   : > { %v652_v27 = vadd.f32 %v650_v25, %v638_v23  ;;  %v653_v28 = vadd.f32 %v651_v26, %v639_v24  ;;  %vm2656_vm0 = vmand %vm2184_vm8, %vm2116_vm2  ;;  %v727_v24 = vrot.slane %v726_v19, 4 }
 0x697   : > { %v692_v2 = vmax.f32 %v690_v59, %v691_v63 }
 0x698   : > { %v694_v30 = vsel %vm678_vm14, %v652_v27, 0.0  ;;  %v695_v31 = vsel %vm2648_vm9, %v653_v28, 0.0  ;;  %v734_v6 = vsel %vm2649_vm6, %v652_v27, 0.0  ;;  %v735_v32 = vsel %vm2650_vm5, %v653_v28, 0.0  ;;  %vm2651_vm14 = vmand %vm2077_vm10, %vm2138_vm7 }
 0x699   : > { %v696_v33 = vsel %vm449_vm15, %v694_v30, 0.0  ;;  %v697_v37 = vsel %vm449_vm15, %v695_v31, 0.0  ;;  %v736_v7 = vsel %vm449_vm15, %v734_v6, 0.0  ;;  %v737_v34 = vsel %vm449_vm15, %v735_v32, 0.0  ;;  %vm2652_vm9 = vmand %vm2086_vm12, %vm2138_vm7  ;;  %1305 = vpush %v692_v2  ;;  %v767_v58 = vpop.xlane.xlu0 %766 }
 0x69a   : > { %v698_v38 = vadd.f32 %v697_v37, %v696_v33  ;;  %v775_v35 = vsel %vm2651_vm14, %v652_v27, 0.0  ;;  %v776_v40 = vsel %vm2652_vm9, %v653_v28, 0.0  ;;  %v738_v41 = vadd.f32 %v737_v34, %v736_v7  ;;  %vm2654_vm10 = vmand %vm2184_vm8, %vm2082_vm11 }
 0x69b   : > { %v777_v43 = vsel %vm449_vm15, %v775_v35, 0.0  ;;  %v778_v44 = vsel %vm449_vm15, %v776_v40, 0.0  ;;  %v827_v20 = vsel %vm2653_vm13, %v652_v27, 0.0  ;;  %v828_v22 = vsel %vm2654_vm10, %v653_v28, 0.0  ;;  %vm2655_vm12 = vmand %vm2160_vm4, %vm2116_vm2 }
 0x69c   : > { %699 = vadd.xlane.f32.xlu1 %v698_v38  ;;  %v779_v46 = vadd.f32 %v778_v44, %v777_v43  ;;  %v829_v48 = vsel %vm449_vm15, %v827_v20, 0.0  ;;  %v830_v49 = vsel %vm449_vm15, %v828_v22, 0.0  ;;  %v863_v50 = vsel %vm2655_vm12, %v652_v27, 0.0  ;;  %vm2657_vm6 = vmand %vm2160_vm4, %vm2138_vm7 }
 0x69d   : > { %v864_v51 = vsel %vm2656_vm0, %v653_v28, 0.0  ;;  %v831_v53 = vadd.f32 %v830_v49, %v829_v48  ;;  %v865_v3 = vsel %vm449_vm15, %v863_v50, 0.0  ;;  %v900_v5 = vsel %vm2657_vm6, %v652_v27, 0.0  ;;  %vm2658_vm5 = vmand %vm2184_vm8, %vm2138_vm7  ;;  %v819_v23 = vpop.xlane.xlu0 %818 }
 0x69e   : > { %v866_v55 = vsel %vm449_vm15, %v864_v51, 0.0  ;;  %v901_v56 = vsel %vm2658_vm5, %v653_v28, 0.0  ;;  %v902_v60 = vsel %vm449_vm15, %v900_v5, 0.0  ;;  %vm2659_vm14 = vmand %vm2247_vm3, %vm2082_vm11  ;;  %v728_v26 = vmax.f32 %v726_v19, %v727_v24 }
 0x69f   : > { %v867_v57 = vadd.f32 %v866_v55, %v865_v3  ;;  %v903_v62 = vsel %vm449_vm15, %v901_v56, 0.0  ;;  %v953_v39 = vsel %vm2659_vm14, %v652_v27, 0.0  ;;  %vm2660_vm4 = vmand %vm2263_vm1, %vm2082_vm11  ;;  %vm2671_vm12 = vcmp.eq.s32.totalorder %v1973_v4, 3 }
 0x6a0   : > { %739 = vadd.xlane.f32.xlu1 %v738_v41  ;;  %v954_v42 = vsel %vm2660_vm4, %v653_v28, 0.0  ;;  %v904_v0 = vadd.f32 %v903_v62, %v902_v60  ;;  %v955_v8 = vsel %vm449_vm15, %v953_v39, 0.0  ;;  %vm2661_vm8 = vmand %vm2247_vm3, %vm2116_vm2  ;;  %v729_v30 = vrot.slane %v728_v26, 2 }
 0x6a1   : > { %v956_v9 = vsel %vm449_vm15, %v954_v42, 0.0  ;;  %v990_v10 = vsel %vm2661_vm8, %v652_v27, 0.0  ;;  %vm2662_vm11 = vmand %vm2263_vm1, %vm2116_vm2  ;;  %v855_v25 = vpop.xlane.xlu0 %854  ;;  %vm2667_vm2 = vcmp.eq.s32.totalorder %v1973_v4, 1  ;;  %vm877_vm0 = vcmp.eq.s32.totalorder %v1973_v4, 4 }
 0x6a2   : > { %v991_v21 = vsel %vm2662_vm11, %v653_v28, 0.0  ;;  %v957_v11 = vadd.f32 %v956_v9, %v955_v8  ;;  %v992_v12 = vsel %vm449_vm15, %v990_v10, 0.0  ;;  %vm2663_vm9 = vmand %vm2247_vm3, %vm2138_vm7  ;;  %v856_v33 = vrot.slane %v855_v25, 4 }
 0x6a3   : > { %v993_v13 = vsel %vm449_vm15, %v991_v21, 0.0  ;;  %v1027_v14 = vsel %vm2663_vm9, %v652_v27, 0.0  ;;  %vm2664_vm13 = vmand %vm2263_vm1, %vm2138_vm7  ;;  %v768_v27 = vrot.slane %v767_v58, 4  ;;  %v730_v34 = vmax.f32 %v728_v26, %v729_v30 }
 0x6a4   : > { %780 = vadd.xlane.f32.xlu1 %v779_v46  ;;  %v1028_v29 = vsel %vm2664_vm13, %v653_v28, 0.0  ;;  %v994_v15 = vadd.f32 %v993_v13, %v992_v12  ;;  %v1029_v16 = vsel %vm449_vm15, %v1027_v14, 0.0  ;;  %v820_v28 = vrot.slane %v819_v23, 4  ;;  %vm2668_vm3 = vmmov %vm2667_vm2 }
 0x6a5   : > { %v1030_v17 = vsel %vm449_vm15, %v1028_v29, 0.0  ;;  %v892_v61 = vpop.xlane.xlu0 %891  ;;  %v769_v31 = vmax.f32 %v767_v58, %v768_v27  ;;  %v857_v44 = vmax.f32 %v855_v25, %v856_v33  ;;  %v731_v46 = vrot.slane %v730_v34, 1  ;;  %vm2672_vm6 = vmmov %vm2671_vm12 }
 0x6a6   : > { %v1031_v18 = vadd.f32 %v1030_v17, %v1029_v16  ;;  %v821_v7 = vmax.f32 %v819_v23, %v820_v28  ;;  %v893_v47 = vrot.slane %v892_v61, 4  ;;  %vm2665_vm15 = vcmp.eq.s32.totalorder %v1973_v4, 0 }
 0x6a7   : > { %v770_v37 = vrot.slane %v769_v31, 2  ;;  %v858_v54 = vrot.slane %v857_v44, 2  ;;  %vm2666_vm1 = vmmov %vm2665_vm15  ;;  %vm2669_vm7 = vcmp.eq.s32.totalorder %v1973_v4, 2  ;;  %vm914_vm5 = vcmp.eq.s32.totalorder %v1973_v4, 5 }
 0x6a8   : > { %832 = vadd.xlane.f32.xlu1 %v831_v53  ;;  %v822_v20 = vrot.slane %v821_v7, 2  ;;  %v894_v59 = vmax.f32 %v892_v61, %v893_v47  ;;  %vm2670_vm10 = vmmov %vm2669_vm7  ;;  %vm967_vm14 = vcmp.eq.s32.totalorder %v1973_v4, 6  ;;  %vm1004_vm4 = vcmp.eq.s32.totalorder %v1973_v4, 7 }
 0x6a9   : > { %v945_v41 = vpop.xlane.xlu0 %944  ;;  %v771_v48 = vmax.f32 %v769_v31, %v770_v37  ;;  %v859_v14 = vmax.f32 %v857_v44, %v858_v54  ;;  %vm1041_vm8 = vcmp.eq.s32.totalorder %v1973_v4, 8 }
 0x6aa   : > { %v946_v52 = vrot.slane %v945_v41, 4  ;;  %v823_v62 = vmax.f32 %v821_v7, %v822_v20  ;;  %v895_v21 = vrot.slane %v894_v59, 2 }
 0x6ab   : > { %v772_v60 = vrot.slane %v771_v48, 1  ;;  %v860_v27 = vrot.slane %v859_v14, 1 }
 0x6ac   : > { %868 = vadd.xlane.f32.xlu1 %v867_v57  ;;  %v732_v57 = vmax.f32 %v730_v34, %v731_v46  ;;  %v824_v13 = vrot.slane %v823_v62, 1  ;;  %v896_v30 = vmax.f32 %v894_v59, %v895_v21 }
 0x6ad   : > { %v982_v5 = vpop.xlane.xlu0 %981  ;;  %v773_v12 = vmax.f32 %v771_v48, %v772_v60  ;;  %v861_v7 = vmax.f32 %v859_v14, %v860_v27 }
 0x6ae   : > { %v983_v10 = vrot.slane %v982_v5, 4  ;;  %v825_v26 = vmax.f32 %v823_v62, %v824_v13 }
 0x6b0   : > { %905 = vadd.xlane.f32.xlu1 %v904_v0  ;;  %v947_v0 = vmax.f32 %v945_v41, %v946_v52  ;;  %v984_v23 = vmax.f32 %v982_v5, %v983_v10 }
 0x6b1   : > { %v1019_v17 = vpop.xlane.xlu0 %1018 }
 0x6b2   : > { %v1020_v61 = vrot.slane %v1019_v17, 4 }
 0x6b4   : > { %958 = vadd.xlane.f32.xlu1 %v957_v11  ;;  %v1021_v34 = vmax.f32 %v1019_v17, %v1020_v61  ;;  %v655_v17 = vld [vmem:[#allocation5] sm:$0x1] }
 0x6b6   : > { %v1022_v46 = vrot.slane %v1021_v34, 2 }
 0x6b8   : > { %995 = vadd.xlane.f32.xlu1 %v994_v15  ;;  %v1023_v5 = vmax.f32 %v1021_v34, %v1022_v46 }
 0x6bc   : > { %1032 = vadd.xlane.f32.xlu1 %v1031_v18  ;;  %v948_v18 = vrot.slane %v947_v0, 2 }
 0x6ca   : > { %s1306_s12 = spop %1305 }
 0x725   : > { %v700_v36 = vpop.xlane.xlu1 %699 }
 0x726   : > { %v701_v6 = vrot.slane %v700_v36, 4 }
 0x728   : > { %v702_v32 = vadd.f32 %v701_v6, %v700_v36 }
 0x729   : > { %v740_v38 = vpop.xlane.xlu1 %739 }
 0x72a   : > { %v703_v35 = vrot.slane %v702_v32, 2  ;;  %v741_v40 = vrot.slane %v740_v38, 4 }
 0x72c   : > { %v742_v43 = vadd.f32 %v741_v40, %v740_v38  ;;  %v704_v45 = vadd.f32 %v703_v35, %v702_v32  ;;  %v985_v32 = vrot.slane %v984_v23, 2  ;;  %v897_v35 = vrot.slane %v896_v30, 1 }
 0x72d   : > { %v781_v22 = vpop.xlane.xlu1 %780  ;;  %v949_v40 = vmax.f32 %v947_v0, %v948_v18 }
 0x72e   : > { %v743_v49 = vrot.slane %v742_v43, 2  ;;  %v782_v50 = vrot.slane %v781_v22, 4  ;;  %v705_v51 = vrot.slane %v704_v45, 1  ;;  %v898_v48 = vmax.f32 %v896_v30, %v897_v35 }
 0x730   : > { %v783_v53 = vadd.f32 %v782_v50, %v781_v22  ;;  %v706_v3 = vadd.f32 %v705_v51, %v704_v45  ;;  %v744_v55 = vadd.f32 %v743_v49, %v742_v43  ;;  %v950_v49 = vrot.slane %v949_v40, 1 }
 0x731   : > { %v833_v56 = vpop.xlane.xlu1 %832  ;;  %v986_v50 = vmax.f32 %v984_v23, %v985_v32 }
 0x732   : > { %v784_v39 = vrot.slane %v783_v53, 2  ;;  %v834_v42 = vrot.slane %v833_v56, 4  ;;  %1307 = vpush %v706_v3  ;;  %v745_v63 = vrot.slane %v744_v55, 1 }
 0x733   : > { %1309 = vpush %v732_v57  ;;  %v951_v57 = vmax.f32 %v949_v40, %v950_v49  ;;  %v987_v59 = vrot.slane %v986_v50, 1 }
 0x734   : > { %v835_v2 = vadd.f32 %v834_v42, %v833_v56  ;;  %v746_v8 = vadd.f32 %v745_v63, %v744_v55  ;;  %v785_v9 = vadd.f32 %v784_v39, %v783_v53 }
 0x735   : > { %v869_v11 = vpop.xlane.xlu1 %868 }
 0x736   : > { %v836_v29 = vrot.slane %v835_v2, 2  ;;  %v870_v15 = vrot.slane %v869_v11, 4  ;;  %1311 = vpush %v746_v8  ;;  %v786_v16 = vrot.slane %v785_v9, 1  ;;  %v1024_v8 = vrot.slane %v1023_v5, 1 }
 0x737   : > { %1313 = vpush %v773_v12 }
 0x738   : > { %v871_v19 = vadd.f32 %v870_v15, %v869_v11  ;;  %v787_v58 = vadd.f32 %v786_v16, %v785_v9  ;;  %v837_v24 = vadd.f32 %v836_v29, %v835_v2  ;;  %v988_v2 = vmax.f32 %v986_v50, %v987_v59  ;;  %v654_v29 = vld [vmem:[#allocation4] sm:$0x1] }
 0x739   : > { %v906_v25 = vpop.xlane.xlu1 %905  ;;  %v1025_v12 = vmax.f32 %v1023_v5, %v1024_v8  ;;  %v708_v15 = vstv %s1306_s12 }
 0x73a   : > { %v872_v36 = vrot.slane %v871_v19, 2  ;;  %v907_v31 = vrot.slane %v906_v25, 4  ;;  %1315 = vpush %v787_v58  ;;  %v838_v28 = vrot.slane %v837_v24, 1  ;;  %v709_v16 = vmax.f32 %v654_v29, %v708_v15 }
 0x73b   : > { %1317 = vpush %v825_v26 }
 0x73c   : > { %v908_v6 = vadd.f32 %v907_v31, %v906_v25  ;;  %v839_v33 = vadd.f32 %v838_v28, %v837_v24  ;;  %v873_v37 = vadd.f32 %v872_v36, %v871_v19  ;;  %v710_v58 = vsel %vm2665_vm15, %v709_v16, %v654_v29 }
 0x73d   : > { %v959_v38 = vpop.xlane.xlu1 %958 }
 0x73e   : > { %v909_v41 = vrot.slane %v908_v6, 2  ;;  %v960_v43 = vrot.slane %v959_v38, 4  ;;  %1319 = vpush %v839_v33  ;;  %v874_v44 = vrot.slane %v873_v37, 1 }
 0x73f   : > { %1321 = vpush %v861_v7 }
 0x740   : > { %v961_v45 = vadd.f32 %v960_v43, %v959_v38  ;;  %v875_v20 = vadd.f32 %v874_v44, %v873_v37  ;;  %v910_v22 = vadd.f32 %v909_v41, %v908_v6 }
 0x741   : > { %v996_v47 = vpop.xlane.xlu1 %995 }
 0x742   : > { %v962_v51 = vrot.slane %v961_v45, 2  ;;  %v997_v52 = vrot.slane %v996_v47, 4  ;;  %1323 = vpush %v875_v20  ;;  %v911_v53 = vrot.slane %v910_v22, 1 }
 0x743   : > { %1325 = vpush %v898_v48 }
 0x744   : > { %v998_v54 = vadd.f32 %v997_v52, %v996_v47  ;;  %v912_v3 = vadd.f32 %v911_v53, %v910_v22  ;;  %v963_v55 = vadd.f32 %v962_v51, %v961_v45 }
 0x745   : > { %v1033_v56 = vpop.xlane.xlu1 %1032 }
 0x746   : > { %v999_v60 = vrot.slane %v998_v54, 2  ;;  %v1034_v62 = vrot.slane %v1033_v56, 4  ;;  %1327 = vpush %v912_v3  ;;  %v964_v39 = vrot.slane %v963_v55, 1 }
 0x747   : > { %1329 = vpush %v951_v57 }
 0x748   : > { %v1035_v42 = vadd.f32 %v1034_v62, %v1033_v56  ;;  %v965_v63 = vadd.f32 %v964_v39, %v963_v55  ;;  %v1000_v0 = vadd.f32 %v999_v60, %v998_v54 }
 0x74a   : > { %v1036_v9 = vrot.slane %v1035_v42, 2  ;;  %1331 = vpush %v965_v63  ;;  %v1001_v10 = vrot.slane %v1000_v0, 1 }
 0x74b   : > { %1333 = vpush %v988_v2 }
 0x74c   : > { %v1037_v21 = vadd.f32 %v1036_v9, %v1035_v42  ;;  %v1002_v11 = vadd.f32 %v1001_v10, %v1000_v0 }
 0x74e   : > { %1335 = vpush %v1002_v11  ;;  %v1038_v13 = vrot.slane %v1037_v21, 1 }
 0x74f   : > { %1337 = vpush %v1025_v12 }
 0x750   : > { %v1039_v14 = vadd.f32 %v1038_v13, %v1037_v21 }
 0x752   : > { %1339 = vpush %v1039_v14 }
 0x763   : > { %s1308_s15 = spop %1307 }
 0x764   : > { %v711_v18 = vstv %s1308_s15  ;;  %s1310_s6 = spop %1309 }
 0x765   : > { %v712_v19 = vadd.f32 %v711_v18, %v655_v17  ;;  %v748_v23 = vstv %s1310_s6 }
 0x766   : > { %v749_v24 = vmax.f32 %v710_v58, %v748_v23 }
 0x767   : > { %v713_v25 = vsel %vm2666_vm1, %v712_v19, %v655_v17  ;;  %s1312_s14 = spop %1311 }
 0x768   : > { %v751_v26 = vstv %s1312_s14  ;;  %v750_v27 = vsel %vm2667_vm2, %v749_v24, %v710_v58  ;;  %s1314_s9 = spop %1313 }
 0x769   : > { %v752_v61 = vadd.f32 %v751_v26, %v713_v25  ;;  %v789_v30 = vstv %s1314_s9 }
 0x76a   : > { %v790_v36 = vmax.f32 %v750_v27, %v789_v30 }
 0x76b   : > { %v753_v31 = vsel %vm2668_vm3, %v752_v61, %v713_v25  ;;  %s1316_s1 = spop %1315 }
 0x76c   : > { %v792_v28 = vstv %s1316_s1  ;;  %v791_v6 = vsel %vm2669_vm7, %v790_v36, %v750_v27  ;;  %s1318_s29 = spop %1317 }
 0x76d   : > { %v793_v32 = vadd.f32 %v792_v28, %v753_v31  ;;  %v841_v33 = vstv %s1318_s29 }
 0x76e   : > { %v842_v37 = vmax.f32 %v791_v6, %v841_v33 }
 0x76f   : > { %v794_v38 = vsel %vm2670_vm10, %v793_v32, %v753_v31  ;;  %s1320_s30 = spop %1319 }
 0x770   : > { %v844_v7 = vstv %s1320_s30  ;;  %v843_v34 = vsel %vm2671_vm12, %v842_v37, %v791_v6  ;;  %s1322_s5 = spop %1321 }
 0x771   : > { %v845_v35 = vadd.f32 %v844_v7, %v794_v38  ;;  %v878_v40 = vstv %s1322_s5 }
 0x772   : > { %v879_v41 = vmax.f32 %v843_v34, %v878_v40 }
 0x773   : > { %v846_v43 = vsel %vm2672_vm6, %v845_v35, %v794_v38  ;;  %s1324_s2 = spop %1323 }
 0x774   : > { %v881_v44 = vstv %s1324_s2  ;;  %v880_v45 = vsel %vm877_vm0, %v879_v41, %v843_v34  ;;  %s1326_s17 = spop %1325 }
 0x775   : > { %v882_v20 = vadd.f32 %v881_v44, %v846_v43  ;;  %v915_v22 = vstv %s1326_s17 }
 0x776   : > { %v916_v46 = vmax.f32 %v880_v45, %v915_v22 }
 0x777   : > { %v883_v47 = vsel %vm877_vm0, %v882_v20, %v846_v43  ;;  %s1328_s7 = spop %1327 }
 0x778   : > { %v918_v48 = vstv %s1328_s7  ;;  %v917_v49 = vsel %vm914_vm5, %v916_v46, %v880_v45  ;;  %s1330_s13 = spop %1329 }
 0x779   : > { %v919_v50 = vadd.f32 %v918_v48, %v883_v47  ;;  %v968_v51 = vstv %s1330_s13 }
 0x77a   : > { %v969_v52 = vmax.f32 %v917_v49, %v968_v51 }
 0x77b   : > { %v920_v53 = vsel %vm914_vm5, %v919_v50, %v883_v47  ;;  %s1332_s28 = spop %1331 }
 0x77c   : > { %v971_v54 = vstv %s1332_s28  ;;  %v970_v3 = vsel %vm967_vm14, %v969_v52, %v917_v49  ;;  %s1334_s8 = spop %1333 }
 0x77d   : > { %v972_v55 = vadd.f32 %v971_v54, %v920_v53  ;;  %v1005_v5 = vstv %s1334_s8 }
 0x77e   : > { %v1006_v56 = vmax.f32 %v970_v3, %v1005_v5 }
 0x77f   : > { %v973_v57 = vsel %vm967_vm14, %v972_v55, %v920_v53  ;;  %s1336_s27 = spop %1335 }
 0x780   : > { %v1008_v59 = vstv %s1336_s27  ;;  %v1007_v60 = vsel %vm1004_vm4, %v1006_v56, %v970_v3  ;;  %s1338_s26 = spop %1337 }
 0x781   : > { %v1009_v62 = vadd.f32 %v1008_v59, %v973_v57  ;;  %v1042_v39 = vstv %s1338_s26 }
 0x782   : > { %v1043_v42 = vmax.f32 %v1007_v60, %v1042_v39 }
 0x783   : > { %v1010_v63 = vsel %vm1004_vm4, %v1009_v62, %v973_v57  ;;  %s1340_s23 = spop %1339 }
 0x784   : > { %v1044_v0 = vsel %vm1041_vm8, %v1043_v42, %v1007_v60  ;;  %v1045_v2 = vstv %s1340_s23 }
 0x785   : > { %1048 = vst [vmem:[#allocation4] sm:$0x1] %v1044_v0  ;;  %v1046_v8 = vadd.f32 %v1045_v2, %v1010_v63 }
 0x787   : > { %v1047_v9 = vsel %vm1041_vm8, %v1046_v8, %v1010_v63 }
 0x788   : > { %1049 = vst [vmem:[#allocation5] sm:$0x1] %v1047_v9 }
 0x789 PF: > { %v1053_v10 = vld [vmem:[#allocation2] sm:$0x1]  ;;  %vm1064_vm11 = vcmp.lt.s32.totalorder %v1973_v4, 4  ;;  %vm2673_vm9 = vcmask 1040384   ;;  %vm1077_vm15 = vcmp.lt.s32.totalorder %v1973_v4, 9  ;;  %vm2677_vm10 = vcmp.eq.s32.totalorder %v1973_v4, 1 }
 0x78a   : > { %v1054_v11 = vsel %vm2673_vm9, %v1053_v10, -inf  ;;  %vm2674_vm13 = vmmov %vm2673_vm9  ;;  %vm2678_vm12 = vcmp.eq.s32.totalorder %v1973_v4, 0  ;;  %s1277_s9 = sshll.u32 %s1669_s0, 4  ;;  %s1129_s1 = sshll.u32 %s289_s10, 4  ;;  %vm2679_vm0 = vcmp.eq.s32.totalorder %v1973_v4, 2  ;;  %s1130_s1 = int_to_ptr.vmem [resolvable:$true] %s1129_s1 }
 0x78b   : > { %1055 = vmax.xlane.f32.xlu0 %v1054_v11  ;;  %vm2675_vm3 = vmmov %vm2673_vm9  ;;  %s2680_s5 = sld [smem:[#allocation30_spill]]  ;;  %s1117_s17 = scalar_lea.sflag [#allocation10], %s1950_s16 }
 0x78c   : > { %v1078_v30 = vld [vmem:[#allocation4] sm:$0x1]  ;;  %vm2676_vm7 = vmmov %vm2675_vm3  ;;  %s1563_s7 = scalar_lea.vmem %s1130_s1, 16  ;;  %p2681_p6 = scmp.ne.s32.totalorder %s2603_s11, 0 }
 0x78d   : > { %p1564_p10 = scmp.ne.s32.totalorder %s1130_s1, %s1563_s7  ;;  %s1688_s0 = smov [#allocation14]  }
 0x78e   : > { %s1567_s13 = sshll.u32 %s1688_s0, 4  ;;  %s1568_s13 = int_to_ptr.vmem [resolvable:$false] %s1567_s13 }
 0x78f   : > { %v1065_v21 = vld [vmem:[#allocation3] sm:$0x1]  ;;  %v1082_v31 = vld [vmem:[#allocation5] sm:$0x1]  ;;  %p1565_p7 = pnand %p1564_p10, %p2681_p6  ;;  %s1569_s28 = scalar_lea.vmem %s1568_s13, 32 }
 0x790   : > { %v1066_v12 = vsel %vm1064_vm11, %v1065_v21, inf  ;;  %p1570_p1 = scmp.lt.s32.totalorder %s1130_s1, %s1568_s13  ;;  %p1571_p12 = scmp.lt.s32.totalorder %s1569_s28, %s1563_s7 }
 0x791   : > { %v1067_v13 = vsel %vm2674_vm13, %v1066_v12, inf  ;;  %s1127_s2 = scalar_lea.hbm %s2680_s5, %s1277_s9  ;;  %p1566_p3 = pneg %p1565_p7 }
 0x792   : > { %1068 = vmin.xlane.f32.xlu0 %v1067_v13  ;;  %p1572_p5 = por %p1571_p12, %p1570_p1 }
 0x794   : > { %p1573_p8 = pnand %p1572_p5, %p1566_p3 }
 0x814   : > { %v1056_v14 = vpop.xlane.xlu0 %1055 }
 0x815   : > { %v1057_v29 = vrot.slane %v1056_v14, 4 }
 0x817   : > { %v1058_v15 = vmax.f32 %v1056_v14, %v1057_v29 }
 0x819   : > { %v1059_v17 = vrot.slane %v1058_v15, 2 }
 0x81b   : > { %v1069_v16 = vpop.xlane.xlu0 %1068  ;;  %v1060_v58 = vmax.f32 %v1058_v15, %v1059_v17 }
 0x81c   : > { %v1070_v18 = vrot.slane %v1069_v16, 4 }
 0x81d   : > { %v1061_v24 = vrot.slane %v1060_v58, 1 }
 0x81e   : > { %v1071_v19 = vmin.f32 %v1069_v16, %v1070_v18 }
 0x81f   : > { %v1062_v26 = vmax.f32 %v1060_v58, %v1061_v24 }
 0x820   : > { %v1072_v23 = vrot.slane %v1071_v19, 2 }
 0x821   : > { %1341 = vpush %v1062_v26 }
 0x822   : > { %v1073_v25 = vmin.f32 %v1071_v19, %v1072_v23 }
 0x824   : > { %v1074_v27 = vrot.slane %v1073_v25, 1 }
 0x826   : > { %v1075_v61 = vmin.f32 %v1073_v25, %v1074_v27 }
 0x828   : > { %1343 = vpush %v1075_v61 }
 0x852   : > { %s2486_s4 = spop %1341 }
 0x853   : > { %v1107_v48 = vstv %s2486_s4 }
 0x854   : > { %v1108_v50 = vsel %vm2678_vm12, %v1107_v48, 0.0 }
 0x859   : > { %s1344_s12 = spop %1343 }
 0x85a   : > { %v1079_v36 = vstv %s1344_s12 }
 0x85b   : > { %vm1080_vm1 = vcmp.ge.f32.partialorder %v1078_v30, %v1079_v36 }
 0x85c   : > { %vm1081_vm2 = vmand %vm1077_vm15, %vm1080_vm1 }
 0x85d   : > { %v1083_v28 = vsel %vm1081_vm2, %v1082_v31, 0.0  ;;  %v1276_v32 = vsel %vm1081_vm2, 1.0, %v1685_v1 }
 0x85e   : > { %v1084_v6 = vsel %vm2675_vm3, %v1083_v28, 0.0  ;;  %v1096_v33 = vsel %vm2676_vm7, %v1276_v32, 0.0 }
 0x85f   : > { %1085 = vadd.xlane.f32.xlu1 %v1084_v6 }
 0x863   : > { %1097 = vadd.xlane.f32.xlu1 %v1096_v33 }
 0x8e8   : > { %v1086_v37 = vpop.xlane.xlu1 %1085 }
 0x8e9   : > { %v1087_v38 = vrot.slane %v1086_v37, 4 }
 0x8eb   : > { %v1088_v7 = vadd.f32 %v1087_v38, %v1086_v37 }
 0x8ec   : > { %v1098_v34 = vpop.xlane.xlu1 %1097 }
 0x8ed   : > { %v1089_v35 = vrot.slane %v1088_v7, 2  ;;  %v1099_v40 = vrot.slane %v1098_v34, 4 }
 0x8ef   : > { %v1100_v41 = vadd.f32 %v1099_v40, %v1098_v34  ;;  %v1090_v43 = vadd.f32 %v1089_v35, %v1088_v7 }
 0x8f1   : > { %v1101_v44 = vrot.slane %v1100_v41, 2  ;;  %v1091_v45 = vrot.slane %v1090_v43, 1 }
 0x8f3   : > { %v1102_v20 = vadd.f32 %v1101_v44, %v1100_v41  ;;  %v1092_v22 = vadd.f32 %v1091_v45, %v1090_v43 }
 0x8f5   : > { %1345 = vpush %v1092_v22  ;;  %v1103_v1 = vrot.slane %v1102_v20, 1 }
 0x8f7   : > { %v1104_v46 = vadd.f32 %v1103_v1, %v1102_v20 }
 0x8f9   : > { %1347 = vpush %v1104_v46 }
 0x926   : > { %s1346_s15 = spop %1345 }
 0x927   : > { %v1109_v47 = vstv %s1346_s15 }
 0x928   : > { %v1110_v49 = vsel %vm2677_vm10, %v1109_v47, 0.0 }
 0x929   : > { %v1111_v51 = vadd.f32 %v1110_v49, %v1108_v50 }
 0x92a   : > { %s1348_s6 = spop %1347 }
 0x92b   : > { %s1106_s14 = smul.f32 2.0, %s1348_s6 }
 0x92d   : > { %v1112_v52 = vstv %s1106_s14 }
 0x92e   : > { %v1113_v53 = vsel %vm2679_vm0, %v1112_v52, 0.0 }
 0x92f   : > { %v1114_v54 = vadd.f32 %v1113_v53, %v1111_v51 }
 0x931   : > { %1115 = vst [vmem:[%s289_s10] sm:$0x1] %v1114_v54 }
 0x932   : > { %1576 = shalt.err (!%p1573_p8)
}
 0x933   : > { %s1577_s8 = scalar_lea.hbm %s1127_s2, 16  ;;  %s1581_s27 = scalar_lea.hbm %s2680_s5, 32 }
 0x934   : > { %p1578_p13 = scmp.ne.s32.totalorder %s1127_s2, %s1577_s8  ;;  %p1582_p11 = scmp.lt.s32.totalorder %s1127_s2, %s2680_s5 }
 0x935   : > { %p1583_p2 = scmp.lt.s32.totalorder %s1581_s27, %s1577_s8 }
 0x936   : > { %p1579_p4 = pnand %p1578_p13, %p2681_p6 }
 0x937   : > { %p1584_p0 = por %p1583_p2, %p1582_p11 }
 0x938   : > { %p1580_p9 = pneg %p1579_p4 }
 0x93a   : > { %p1585_p10 = pnand %p1584_p0, %p1580_p9 }
 0x93c   : > { %1588 = shalt.err (!%p1585_p10)
}
 0x93d   : > { %1361 = dma.vmem_to_hbm [thread:$0]  (%p2681_p6), %s1130_s1, 16, %s1127_s2, %s1117_s17  }
 0x93e PF: > { %s1141_s4 = sand.u32 1, %s1657_s21   ;;  %p2682_p7 = scmp.ne.s32.totalorder %s2604_s18, 0 }
 0x93f   : > { %p2683_p3 = scmp.ge.s32.totalorder %s1677_s25, 2  ;;  %s1142_s12 = scalar_lea.sflag [#allocation10], %s1141_s4 }
 0x941   : > { %p1379_p1 = pnand %p2683_p3, %p2682_p7 }
 0x943   : > { %p1380_p12 = pneg %p1379_p1 }
 0x945   : > { %1640 = dma.done.wait (%p1380_p12), %s1142_s12, 16  }
 0x946   : > { %1642 = vsyncadd (%p1380_p12), %s1142_s12, 4294967280  ;;  %s25_s25 = sadd.s32 1, %s1677_s25   ;;  %s2684_s15 = sld [smem:[#allocation27_spill]] }
 0x947   : > { %p22_p5 = scmp.ge.s32.totalorder %s25_s25, 4   ;;  %s2685_s11 = sld [smem:[#allocation24_spill]] }
 0x948   : > { %s2686_s23 = sld [smem:[#allocation26_spill]]  ;;  %s2688_s18 = smov %s1649_s19 }
 0x949   : > { %s2687_s6 = sld [smem:[#allocation25_spill]]  ;;  %s2689_s19 = smov %s1653_s20 }
 0x94a   : > { %s2691_s21 = smov %s1661_s22  ;;  %s2693_s0 = smov %s1673_s24 }
 0x94b   :  { %24 = sbr.rel (!%p22_p5) target bundleno = 17 (0x11), region = 114 }
 0x94c   : > { %s2690_s20 = smov %s2684_s15 }
 0x94d   : > { %s2692_s22 = smov %s2685_s11 }
 0x94f   : > { %s2694_s24 = smov %s2687_s6 }
 0x950   :  { %1146 = vsyncpa [#allocation9], 1 }
 0x951   :  { %1148 = vsyncpa [#allocation9 + $0x1], 1 }
 0x952   :  { %1149 = vsyncpa [#allocation12], 1 }
 0x953   :  { %1151 = vsyncpa [#allocation12 + $0x1], 1 }
 0x954   :  { %1152 = vsyncpa [#allocation10], 1 }
 0x955   :  { %1154 = vsyncpa [#allocation10 + $0x1], 1 }

</bundles_post_ra>
